<compile_context>
chip_gen: v7x
topology: tpu7x:2x2x1
jax: 0.10.0
libtpu: 0.0.40
codegen_flags: <defaults>
</compile_context>

<pallas_src>
from typing import NamedTuple

import jax
import jax.numpy as jnp
from jax.experimental import pallas as pl
from jax.experimental.pallas import tpu as pltpu


def _round_up(x, m):
    return (x + m - 1) // m * m


# ----------------------------- kernel ---------------------------------------
def _oim_lse_kernel(x_ref, w_ref, b_ref, lse_ref, m_scr, l_scr):
    """grid = (N tiles, C tiles); per-row online log-sum-exp over class tiles."""
    c = pl.program_id(1)

    @pl.when(c == 0)
    def _init():
        m_scr[...] = jnp.full(m_scr.shape, -1e30, jnp.float32)
        l_scr[...] = jnp.zeros(l_scr.shape, jnp.float32)

    # bf16 x bf16 -> f32 MXU matmul; weights are already K-major [D_pad, tc].
    # Padded-class masking is a precomputed additive bias row (0 / -1e30):
    # one vadd per element, no iota/compare/select on the hot path.
    logits = jnp.dot(x_ref[...], w_ref[...],
                     preferred_element_type=jnp.float32) + b_ref[...]  # [tn, tc]

    m_prev = m_scr[...]
    m_new = jnp.maximum(m_prev, jnp.max(logits, axis=-1, keepdims=True))
    # exp(-1e30 - m_new) underflows to 0, so padded columns contribute nothing.
    l_scr[...] = (jnp.exp(m_prev - m_new) * l_scr[...]
                  + jnp.sum(jnp.exp(logits - m_new), axis=-1, keepdims=True))
    m_scr[...] = m_new

    @pl.when(c == pl.num_programs(1) - 1)
    def _finalize():
        lse_ref[...] = m_scr[...] + jnp.log(l_scr[...])


# ----------------------------- packing (one-time) ----------------------------
class PackedOIMWeights(NamedTuple):
    w: jax.Array       # [D_pad, C_pad] bf16 :  [ lut.T | 0 pad | cq.T | 0 pad ]
    bias: jax.Array    # [1, C_pad]   f32  :  0 for real classes, -1e30 for pad
    num_pids: int
    num_cq: int
    num_features: int
    tc: int


def pack_oim_weights(lut, cq, *, tc=1024):
    """One-time repack of the OIM buffers into the kernel's weight layout.

    Call once (or whenever lut/cq buffers change storage); do NOT re-pack per
    training step — that would re-read/write the whole class matrix in HBM.
    """
    P, D = lut.shape
    Q, D2 = cq.shape
    assert D == D2 and P >= 1 and Q >= 1
    tc = _round_up(tc, 128)
    D_pad = _round_up(D, 128)
    P_pad = _round_up(P, tc)
    Q_pad = _round_up(Q, tc)
    C_pad = P_pad + Q_pad

    w = jnp.zeros((D_pad, C_pad), jnp.bfloat16)
    w = w.at[:D, :P].set(lut.T.astype(jnp.bfloat16))
    w = w.at[:D, P_pad:P_pad + Q].set(cq.T.astype(jnp.bfloat16))

    col = jnp.arange(C_pad)
    real = (col < P) | ((col >= P_pad) & (col < P_pad + Q))
    bias = jnp.where(real, 0.0, -1e30).astype(jnp.float32)[None, :]
    return PackedOIMWeights(w, bias, P, Q, D, tc)


# ----------------------------- wrapper ---------------------------------------
def oim_loss_pallas(inputs, labels, lut, cq, oim_scalar, *, packed=None,
                    tn=None, vmem_limit_bytes=None):
    """inputs:[N,D] f32, labels:[N] int (= targets-1), lut:[P,D], cq:[Q,D]."""
    N, D = inputs.shape
    if packed is None:
        # TODO(synk): hoist this one-time repack out of the training loop; lut/cq
        # are registered buffers, so the [D_pad, C_pad] bf16 slab can persist.
        packed = pack_oim_weights(lut, cq)
    assert packed.num_features == D
    P, Q, tc = packed.num_pids, packed.num_cq, packed.tc
    D_pad, C_pad = packed.w.shape

    # Keep n_tiles minimal (no redundant weight re-streaming).  On v7x pass a
    # smaller tn (e.g. N_pad // 2) so the 'parallel' N axis feeds both cores.
    if tn is None:
        tn = min(_round_up(N, 8), 256)
    tn = _round_up(min(tn, _round_up(N, 8)), 8)
    N_pad = _round_up(N, tn)
    n_tiles = N_pad // tn
    c_tiles = C_pad // tc

    # One-time pad/cast of x with oim_scalar folded in (fuses with the pad).
    x_p = jnp.zeros((N_pad, D_pad), jnp.bfloat16).at[:N, :D].set(
        (inputs * oim_scalar).astype(jnp.bfloat16))

    if vmem_limit_bytes is None:
        # double-buffered x tile + weight tile + bias tile + output, plus scratch
        blk = 2 * (tn * D_pad * 2 + D_pad * tc * 2 + tc * 4 + tn * 4) + 2 * tn * 4
        vmem_limit_bytes = int(min(64 << 20, max(16 << 20, 4 * blk)))

    lse = pl.pallas_call(
        _oim_lse_kernel,
        grid=(n_tiles, c_tiles),
        in_specs=[
            pl.BlockSpec((tn, D_pad), lambda i, c: (i, 0)),
            pl.BlockSpec((D_pad, tc), lambda i, c: (0, c)),
            pl.BlockSpec((1, tc), lambda i, c: (0, c)),
        ],
        out_specs=pl.BlockSpec((tn, 1), lambda i, c: (i, 0)),
        out_shape=jax.ShapeDtypeStruct((N_pad, 1), jnp.float32),
        scratch_shapes=[
            pltpu.VMEM((tn, 1), jnp.float32),   # running max
            pltpu.VMEM((tn, 1), jnp.float32),   # running sum(exp)
        ],
        compiler_params=pltpu.CompilerParams(
            dimension_semantics=("parallel", "arbitrary"),
            vmem_limit_bytes=vmem_limit_bytes,
        ),
    )(x_p, packed.w, packed.bias)[:N, 0]

    # Target logit via an O(N*D) gather + row-dot in XLA (moved out of the
    # O(N*C) kernel hot loop).  Precision mirrors the kernel: bf16 operands,
    # f32 accumulation.
    labels = labels.astype(jnp.int32)
    safe = jnp.clip(labels, 0, P + Q - 1)
    lut_rows = jnp.take(lut, jnp.clip(safe, 0, P - 1), axis=0)
    cq_rows = jnp.take(cq, jnp.clip(safe - P, 0, Q - 1), axis=0)
    w_rows = jnp.where((safe < P)[:, None], lut_rows, cq_rows)
    xs = (inputs * oim_scalar).astype(jnp.bfloat16).astype(jnp.float32)
    tgt = jnp.sum(xs * w_rows.astype(jnp.bfloat16).astype(jnp.float32), axis=-1)

    # F.cross_entropy(..., ignore_index=5554) masked mean + nan_to_num.
    valid = jnp.logical_and(labels >= 0, labels != 5554)
    vf = valid.astype(jnp.float32)
    cnt = jnp.sum(vf)
    total = jnp.sum((lse - tgt) * vf)
    return jnp.where(cnt > 0.0, total / jnp.maximum(cnt, 1.0), 0.0)


# ----------------------------- references ------------------------------------
def _masked_ce(logits, labels, num_classes):
    valid = jnp.logical_and(labels >= 0, labels != 5554)
    logp = jax.nn.log_softmax(logits, axis=-1)
    safe = jnp.clip(labels, 0, num_classes - 1)
    tgt = jnp.take_along_axis(logp, safe[:, None], axis=1)[:, 0]
    vf = valid.astype(jnp.float32)
    cnt = jnp.sum(vf)
    return jnp.where(cnt > 0, jnp.sum(-tgt * vf) / jnp.maximum(cnt, 1.0), 0.0)


def oim_loss_reference_f32(inputs, labels, lut, cq, oim_scalar):
    """Pure-f32 JAX reference mirroring the PyTorch forward semantics."""
    w = jnp.concatenate([lut, cq], axis=0)
    logits = jnp.dot(inputs, w.T, precision=jax.lax.Precision.HIGHEST) * oim_scalar
    return _masked_ce(logits, labels, w.shape[0])


def oim_loss_reference_bf16(inputs, labels, lut, cq, oim_scalar):
    """Same semantics with the kernel's bf16 rounding of x*scale and weights."""
    xs = (inputs * oim_scalar).astype(jnp.bfloat16).astype(jnp.float32)
    w = jnp.concatenate([lut, cq], axis=0).astype(jnp.bfloat16).astype(jnp.float32)
    logits = jnp.dot(xs, w.T, precision=jax.lax.Precision.HIGHEST)
    return _masked_ce(logits, labels, w.shape[0])


# ----------------------------- demo / test ------------------------------------
if __name__ == "__main__":
    # OIMLoss hyper-parameters (shapes as in __init__), kept small.
    num_features = 32      # D
    num_pids = 300         # P (lut rows)
    num_cq_size = 200      # Q (cq rows)
    oim_momentum = 0.5     # used only in OIM.backward buffer update, not in loss
    oim_scalar = 30.0
    num_rois = 128         # two roi_label lists of 64 each

    key = jax.random.PRNGKey(0)
    k_in, k_lut, k_cq, k_id, k_kind = jax.random.split(key, 5)

    # roi labels: 0 = background (filtered), 1..P = labeled id, 5555 = unlabeled
    ids = jax.random.randint(k_id, (num_rois,), 1, num_pids + 1)
    kind = jax.random.randint(k_kind, (num_rois,), 0, 3)
    targets_all = jnp.where(kind == 0, 0,
                            jnp.where(kind == 1, ids, 5555)).astype(jnp.int32)
    roi_label = [targets_all[:num_rois // 2], targets_all[num_rois // 2:]]

    # forward() preamble: targets = cat(roi_label); label = targets - 1
    targets = jnp.concatenate(roi_label)
    labels = targets - 1

    # L2-normalized features; buffers are zeros in __init__ — use deterministic
    # normalized randoms so the numeric check is non-trivial.
    inputs = jax.random.normal(k_in, (num_rois, num_features), jnp.float32)
    inputs = inputs / jnp.linalg.norm(inputs, axis=1, keepdims=True)
    lut = jax.random.normal(k_lut, (num_pids, num_features), jnp.float32)
    lut = lut / jnp.linalg.norm(lut, axis=1, keepdims=True)
    cq = jax.random.normal(k_cq, (num_cq_size, num_features), jnp.float32)
    cq = cq / jnp.linalg.norm(cq, axis=1, keepdims=True)

    ref_bf16 = jax.block_until_ready(
        oim_loss_reference_bf16(inputs, labels, lut, cq, oim_scalar))
    ref_f32 = jax.block_until_ready(
        oim_loss_reference_f32(inputs, labels, lut, cq, oim_scalar))

    # Config 1: single N tile (v5e/v6e-friendly), one lut tile + one cq tile.
    packed1 = pack_oim_weights(lut, cq, tc=512)
    loss1 = jax.block_until_ready(
        oim_loss_pallas(inputs, labels, lut, cq, oim_scalar,
                        packed=packed1, tn=128))

    # Config 2: two N tiles (v7x two-TensorCore sharding) and several class tiles.
    packed2 = pack_oim_weights(lut, cq, tc=128)
    loss2 = jax.block_until_ready(
        oim_loss_pallas(inputs, labels, lut, cq, oim_scalar,
                        packed=packed2, tn=64))

    for loss in (loss1, loss2):
        assert jnp.allclose(loss, ref_bf16, rtol=2e-3, atol=2e-3), (loss, ref_bf16)
        assert jnp.allclose(loss, ref_f32, rtol=2e-2, atol=2e-2), (loss, ref_f32)

    # TODO(synk): lut/cq momentum write-back, circular-queue insert and header_cq
    # advance live in OIM.backward in PyTorch; only the forward loss is here.
    print("KERNEL_OK")
</pallas_src>

<mosaic_0001>
module attributes {stable_mosaic.version = 11 : i64} {
  func.func @_oim_lse_kernel(%arg0: i32, %arg1: i32, %arg2: memref<128x128xbf16, #tpu.memory_space<vmem>>, %arg3: memref<128x512xbf16, #tpu.memory_space<vmem>>, %arg4: memref<1x512xf32, #tpu.memory_space<vmem>>, %arg5: memref<128x1xf32, #tpu.memory_space<vmem>>, %arg6: memref<128x1xf32, #tpu.memory_space<vmem>>, %arg7: memref<128x1xf32, #tpu.memory_space<vmem>>) attributes {dimension_semantics = [#tpu.dimension_semantics<parallel>, #tpu.dimension_semantics<arbitrary>], iteration_bounds = array<i64: 1, 2>, scalar_prefetch = 0 : i64, scratch_operands = 2 : i64, tpu.core_type = #tpu.core_type<tc>, window_params = [{transform_indices = @transform_0, window_bounds = array<i64: 128, 128>}, {transform_indices = @transform_1, window_bounds = array<i64: 128, 512>}, {transform_indices = @transform_2, window_bounds = array<i64: 1, 512>}, {transform_indices = @transform_3, window_bounds = array<i64: 128, 1>}]} {
    %c0_i32 = arith.constant 0 : i32
    %0 = arith.cmpi eq, %arg1, %c0_i32 : i32
    %1 = arith.extui %0 : i1 to i32
    %c0_i32_0 = arith.constant 0 : i32
    %2 = arith.cmpi ne, %1, %c0_i32_0 : i32
    scf.if %2 {
      %cst_17 = arith.constant -1.000000e+30 : f32
      %28 = vector.broadcast %cst_17 : f32 to vector<128x1xf32>
      %c0_18 = arith.constant 0 : index
      %c0_19 = arith.constant 0 : index
      %29 = vector.load %arg6[%c0_18, %c0_19] : memref<128x1xf32, #tpu.memory_space<vmem>>, vector<128x1xf32>
      tpu.vector_store %arg6[%c0_18, %c0_19], %28 {strides = array<i32>} : memref<128x1xf32, #tpu.memory_space<vmem>>, vector<128x1xf32>,
      %cst_20 = arith.constant 0.000000e+00 : f32
      %30 = vector.broadcast %cst_20 : f32 to vector<128x1xf32>
      %c0_21 = arith.constant 0 : index
      %c0_22 = arith.constant 0 : index
      %31 = vector.load %arg7[%c0_21, %c0_22] : memref<128x1xf32, #tpu.memory_space<vmem>>, vector<128x1xf32>
      tpu.vector_store %arg7[%c0_21, %c0_22], %30 {strides = array<i32>} : memref<128x1xf32, #tpu.memory_space<vmem>>, vector<128x1xf32>,
    } else {
    }
    %c0 = arith.constant 0 : index
    %c0_1 = arith.constant 0 : index
    %3 = vector.load %arg2[%c0, %c0_1] : memref<128x128xbf16, #tpu.memory_space<vmem>>, vector<128x128xbf16>
    %c0_2 = arith.constant 0 : index
    %c0_3 = arith.constant 0 : index
    %4 = vector.load %arg3[%c0_2, %c0_3] : memref<128x512xbf16, #tpu.memory_space<vmem>>, vector<128x512xbf16>
    %cst = arith.constant dense<0.000000e+00> : vector<128x512xf32>
    %5 = tpu.matmul %3, %4, %cst {dimension_numbers = #tpu.dot_dimension_numbers<[1], [0], [0], [1], [0, 0, 1, 1], [], []>} : vector<128x128xbf16>, vector<128x512xbf16>, vector<128x512xf32> -> vector<128x512xf32>
    %c0_4 = arith.constant 0 : index
    %c0_5 = arith.constant 0 : index
    %6 = vector.load %arg4[%c0_4, %c0_5] : memref<1x512xf32, #tpu.memory_space<vmem>>, vector<1x512xf32>
    %7 = vector.broadcast %6 : vector<1x512xf32> to vector<128x512xf32>
    %8 = arith.addf %5, %7 : vector<128x512xf32>
    %c0_6 = arith.constant 0 : index
    %c0_7 = arith.constant 0 : index
    %9 = vector.load %arg6[%c0_6, %c0_7] : memref<128x1xf32, #tpu.memory_space<vmem>>, vector<128x1xf32>
    %cst_8 = arith.constant dense<0xFF800000> : vector<128xf32>
    %10 = vector.multi_reduction <maximumf>, %8, %cst_8 [1] : vector<128x512xf32> to vector<128xf32>
    %11 = vector.shape_cast %10 : vector<128xf32> to vector<128x1xf32>
    %12 = arith.maximumf %9, %11 : vector<128x1xf32>
    %13 = arith.subf %9, %12 : vector<128x1xf32>
    %14 = math.exp %13 : vector<128x1xf32>
    %c0_9 = arith.constant 0 : index
    %c0_10 = arith.constant 0 : index
    %15 = vector.load %arg7[%c0_9, %c0_10] : memref<128x1xf32, #tpu.memory_space<vmem>>, vector<128x1xf32>
    %16 = arith.mulf %14, %15 : vector<128x1xf32>
    %17 = vector.broadcast %12 : vector<128x1xf32> to vector<128x512xf32>
    %18 = arith.subf %8, %17 : vector<128x512xf32>
    %19 = math.exp %18 : vector<128x512xf32>
    %cst_11 = arith.constant dense<0.000000e+00> : vector<128xf32>
    %20 = vector.multi_reduction <add>, %19, %cst_11 [1] : vector<128x512xf32> to vector<128xf32>
    %21 = vector.shape_cast %20 : vector<128xf32> to vector<128x1xf32>
    %22 = arith.addf %16, %21 : vector<128x1xf32>
    %c0_12 = arith.constant 0 : index
    %c0_13 = arith.constant 0 : index
    %23 = vector.load %arg7[%c0_12, %c0_13] : memref<128x1xf32, #tpu.memory_space<vmem>>, vector<128x1xf32>
    tpu.vector_store %arg7[%c0_12, %c0_13], %22 {strides = array<i32>} : memref<128x1xf32, #tpu.memory_space<vmem>>, vector<128x1xf32>,
    %c0_14 = arith.constant 0 : index
    %c0_15 = arith.constant 0 : index
    %24 = vector.load %arg6[%c0_14, %c0_15] : memref<128x1xf32, #tpu.memory_space<vmem>>, vector<128x1xf32>
    tpu.vector_store %arg6[%c0_14, %c0_15], %12 {strides = array<i32>} : memref<128x1xf32, #tpu.memory_space<vmem>>, vector<128x1xf32>,
    %c1_i32 = arith.constant 1 : i32
    %25 = arith.cmpi eq, %arg1, %c1_i32 : i32
    %26 = arith.extui %25 : i1 to i32
    %c0_i32_16 = arith.constant 0 : i32
    %27 = arith.cmpi ne, %26, %c0_i32_16 : i32
    scf.if %27 {
      %c0_17 = arith.constant 0 : index
      %c0_18 = arith.constant 0 : index
      %28 = vector.load %arg6[%c0_17, %c0_18] : memref<128x1xf32, #tpu.memory_space<vmem>>, vector<128x1xf32>
      %c0_19 = arith.constant 0 : index
      %c0_20 = arith.constant 0 : index
      %29 = vector.load %arg7[%c0_19, %c0_20] : memref<128x1xf32, #tpu.memory_space<vmem>>, vector<128x1xf32>
      %30 = math.log %29 : vector<128x1xf32>
      %31 = arith.addf %28, %30 : vector<128x1xf32>
      %c0_21 = arith.constant 0 : index
      %c0_22 = arith.constant 0 : index
      %32 = vector.load %arg5[%c0_21, %c0_22] : memref<128x1xf32, #tpu.memory_space<vmem>>, vector<128x1xf32>
      tpu.vector_store %arg5[%c0_21, %c0_22], %31 {strides = array<i32>} : memref<128x1xf32, #tpu.memory_space<vmem>>, vector<128x1xf32>,
    } else {
    }
    return
  }
  func.func @transform_0(%arg0: i32, %arg1: i32) -> (i32, i32) {
    %c0_i32 = arith.constant 0 : i32
    %c0_i32_0 = arith.constant 0 : i32
    return %arg0, %c0_i32 : i32, i32
  }
  func.func @transform_1(%arg0: i32, %arg1: i32) -> (i32, i32) {
    %c0_i32 = arith.constant 0 : i32
    %c0_i32_0 = arith.constant 0 : i32
    return %c0_i32, %arg1 : i32, i32
  }
  func.func @transform_2(%arg0: i32, %arg1: i32) -> (i32, i32) {
    %c0_i32 = arith.constant 0 : i32
    %c0_i32_0 = arith.constant 0 : i32
    return %c0_i32, %arg1 : i32, i32
  }
  func.func @transform_3(%arg0: i32, %arg1: i32) -> (i32, i32) {
    %c0_i32 = arith.constant 0 : i32
    %c0_i32_0 = arith.constant 0 : i32
    return %arg0, %c0_i32 : i32, i32
  }
}

</mosaic_0001>

<bundles_post_ra>
// kernel: tpu_custom_call.1
= control target key start
LH: loop header
LB: loop body
LE: loop exit
PB: predicated region body
PF: predicated region fallthrough
CT: control target
= control target key end

     0   :  { %8 = vsyncpa [#allocation5], 0  ;;  %s3084_s0 = inlined_call_operand.hbm [shape: bf16[128,128], index: 0, kind: input, shape index: {}]   ;;  %s3085_s1 = inlined_call_operand.hbm [shape: bf16[128,1024], index: 1, kind: input, shape index: {}]   ;;  %s3086_s2 = inlined_call_operand.hbm [shape: f32[1,1024], index: 2, kind: input, shape index: {}]   ;;  %s3087_s3 = inlined_call_operand.vmem [shape: f32[128,1], index: 3, kind: output, shape index: {}]  }
   0x1   :  { %9 = vsyncpa [#allocation7], 0 }
   0x2   :  { %11 = vsyncpa [#allocation7 + $0x1], 0  ;;  %s2173_s12 = smov 0   ;;  %s2175_s13 = smov 0  }
   0x3   :  { %s2177_s14 = smov 0   ;;  %s2179_s15 = smov 0  }
   0x4   :  { %s2181_s16 = smov 0   ;;  %s2183_s17 = smov 0  }
   0x5 LB: > { %s26_s18 = sadd.s32 1, %s2136_s16  ;;  %s62_s19 = sadd.s32 1, %s2128_s14  ;;  %s2140_s17 = sphi %s2183_s17, %s17_s17   ;;  %s2136_s16 = sphi %s2181_s16, %s3264_s16   ;;  %s2132_s15 = sphi %s2179_s15, %s3263_s15   ;;  %s2128_s14 = sphi %s2177_s14, %s3262_s14   ;;  %s2124_s13 = sphi %s2175_s13, %s3261_s13   ;;  %s2120_s12 = sphi %s2173_s12, %s3260_s12  }
   0x6   : > { %p27_p0 = scmp.ge.s32.totalorder %s26_s18, 2  ;;  %p69_p1 = scmp.ne.s32.totalorder %s2128_s14, %s2124_s13 }
   0x7   : > { %p70_p2 = scmp.eq.s32.totalorder %s2140_s17, 0  ;;  %p1689_p4 = scmp.lt.s32.totalorder %s2140_s17, 2 }
   0x8   : > { %s3266_s18 = smov (%p27_p0, %s26_s18), 0  ;;  %s167_s21 = sand.u32 1, %s2140_s17  }
   0x9   : > { %p71_p3 = por %p70_p2, %p69_p1  ;;  %s59_s20 = ssub.s32 %s2136_s16, %s3266_s18 }
   0xa   : > { %p60_p5 = scmp.eq.s32.totalorder %s59_s20, 0  ;;  %s169_s22 = sand.u32 1, %s2128_s14  }
   0xb   : > { %s1667_s23 = sshll.u32 %s2136_s16, 8  ;;  %s1611_s25 = sshll.u32 %s169_s22, 8 }
   0xc   : > { %s2217_s24 = scalar_select %p60_p5, %s2128_s14, %s62_s19  }
   0xd   : > { %s2224_s28 = scalar_lea.hbm %s3085_s1, %s1667_s23  ;;  %p2226_p6 = pnand %p1689_p4, %p71_p3 }
   0xe   : > { %s171_s30 = scalar_lea.vmem [#allocation6], %s1611_s25  ;;  %s2232_s5 = scalar_lea.sflag [#allocation7], %s167_s21 }
   0xf   : > { %s3141_s29 = scalar_select %p2226_p6, 1, 0 }
  0x10   : > { %s178_s4 = sshll.u32 %s171_s30, 4  ;;  %s1998_s6 = scalar_lea.hbm %s2224_s28, 4096  ;;  %s2230_s4 = int_to_ptr.vmem [resolvable:$true] %s178_s4 }
  0x11   : > { %p1999_p7 = scmp.ne.s32.totalorder %s2224_s28, %s1998_s6  ;;  %p3088_p8 = pneg %p2226_p6 }
  0x12   : > { %s2003_s9 = scalar_lea.hbm %s3085_s1, 8192  ;;  %p2004_p11 = scmp.lt.u32.totalorder %s2224_s28, %s3085_s1 }
  0x13   : > { %p2001_p9 = pnand %p3088_p8, %p1999_p7  ;;  %p2005_p12 = scmp.lt.u32.totalorder %s2003_s9, %s1998_s6 }
  0x14   : > { %p2007_p0 = scmp.lt.u32.totalorder %s1998_s6, %s2224_s28 }
  0x15   : > { %p2002_p10 = pneg %p2001_p9  ;;  %p2006_p13 = por %p2005_p12, %p2004_p11 }
  0x17   : > { %p2008_p1 = por %p2007_p0, %p2006_p13 }
  0x19   : > { %p2009_p2 = pnand %p2008_p1, %p2002_p10 }
  0x1b   : > { %2012 = shalt.err (!%p2009_p2)
}
  0x1c   : > { %s2013_s19 = scalar_lea.vmem %s2230_s4, 4096  ;;  %s2142_s20 = smov [#allocation6]  }
  0x1d   : > { %p2014_p3 = scmp.ne.s32.totalorder %s2230_s4, %s2013_s19  ;;  %s2018_s21 = sshll.u32 %s2142_s20, 4  ;;  %s2019_s21 = int_to_ptr.vmem [resolvable:$false] %s2018_s21 }
  0x1e   : > { %s2020_s23 = scalar_lea.vmem %s2019_s21, 8192  ;;  %p2021_p7 = scmp.lt.s32.totalorder %s2230_s4, %s2019_s21 }
  0x1f   : > { %p2016_p4 = pnand %p2014_p3, %p3088_p8  ;;  %p2022_p9 = scmp.lt.s32.totalorder %s2020_s23, %s2013_s19 }
  0x21   : > { %p2017_p5 = pneg %p2016_p4  ;;  %p2023_p11 = por %p2022_p9, %p2021_p7 }
  0x23   : > { %p2024_p12 = pnand %p2023_p11, %p2017_p5 }
  0x25   : > { %2027 = shalt.err (!%p2024_p12)
}
  0x26   : > { %s2143_s25 = smov 512   ;;  %s2144_s26 = smov 256  }
  0x27   : > { %s2145_s27 = smov 16   ;;  %s1607_s30 = sadd.s32 4294967295, %s2140_s17  }
  0x28   : > { %1684 = dma.hbm_to_vmem [thread:$0]  (!%p2226_p6), %s2224_s28, 4096, %s2230_s4, %s2232_s5, %s2143_s25, %s2144_s26, %s2145_s27  }
  0x29   : > { %p75_p10 = scmp.ne.s32.totalorder %s2124_s13, %s2120_s12  ;;  %p2265_p13 = scmp.eq.s32.totalorder %s1607_s30, 0 }
  0x2a   : > { %p1608_p0 = scmp.ge.s32.totalorder %s2140_s17, 1  ;;  %p138_p1 = scmp.lt.s32.totalorder %s2140_s17, 3 }
  0x2b   : > { %s3142_s6 = scalar_select %p2265_p13, 1, 0 }
  0x2c   : > { %p2273_p2 = por %p2265_p13, %p75_p10  ;;  %p2277_p3 = pnand %p1608_p0, %p138_p1 }
  0x2d   : > { %s2146_s12 = smov [#allocation4]   ;;  %s1614_s4 = sshll.u32 %s169_s22, 2 }
  0x2e   : > { %s3143_s7 = scalar_select %p2273_p2, 1, 0 }
  0x2f   : > { %s3144_s8 = scalar_select %p2277_p3, 1, 0 }
  0x30   : > { %s153_s28 = sshll.u32 %s2146_s12, 4  ;;  %p1677_p4 = pneg %p2277_p3  ;;  %s2281_s28 = int_to_ptr.vmem [resolvable:$true] %s153_s28 }
  0x31   : > { %s1668_s9 = sshll.u32 %s2136_s16, 6  ;;  %s192_s21 = scalar_lea.vmem [#allocation8], %s1614_s4 }
  0x32   : > { %p2290_p5 = pnand %p1677_p4, %p2265_p13  ;;  %s2297_s20 = scalar_lea.hbm %s3086_s2, %s1668_s9 }
  0x33   : > { %s200_s23 = sshll.u32 %s192_s21, 4  ;;  %s2028_s22 = scalar_lea.hbm %s3084_s0, 1024  ;;  %s2299_s23 = int_to_ptr.vmem [resolvable:$true] %s200_s23 }
  0x34   : > { %p2029_p7 = scmp.ne.s32.totalorder %s3084_s0, %s2028_s22  ;;  %p2030_p9 = pneg %p2290_p5 }
  0x35   : > { %p2035_p10 = scmp.lt.u32.totalorder %s2028_s22, %s3084_s0 }
  0x36   : > { %p2031_p11 = pnand %p2030_p9, %p2029_p7 }
  0x38   : > { %p2032_p12 = pneg %p2031_p11 }
  0x3a   : > { %p2037_p0 = pnand %p2035_p10, %p2032_p12 }
  0x3c   : > { %2040 = shalt.err (!%p2037_p0)
}
  0x3d   : > { %s2041_s4 = scalar_lea.vmem %s2281_s28, 1024  ;;  %p2049_p2 = scmp.lt.s32.totalorder %s2281_s28, %s2281_s28 }
  0x3e   : > { %p2042_p1 = scmp.ne.s32.totalorder %s2281_s28, %s2041_s4  ;;  %p2050_p13 = scmp.lt.s32.totalorder %s2041_s4, %s2041_s4 }
  0x40   : > { %p2044_p4 = pnand %p2042_p1, %p2030_p9  ;;  %p2051_p3 = por %p2050_p13, %p2049_p2 }
  0x42   : > { %p2045_p8 = pneg %p2044_p4 }
  0x44   : > { %p2052_p6 = pnand %p2051_p3, %p2045_p8 }
  0x46   : > { %2055 = shalt.err (!%p2052_p6)
}
  0x47   : > { %s2147_s9 = smov 64   ;;  %s2148_s21 = smov 4  }
  0x48   : > { %1680 = dma.hbm_to_vmem [thread:$0]  (!%p2290_p5), %s3084_s0, 1024, %s2281_s28, [#allocation5], %s2147_s9, %s2147_s9, %s2148_s21  }
  0x49   : > { %s2056_s22 = scalar_lea.hbm %s2297_s20, 64  ;;  %p3146_p9 = scmp.ne.s32.totalorder %s3141_s29, 0 }
  0x4a   : > { %p2057_p7 = scmp.ne.s32.totalorder %s2297_s20, %s2056_s22  ;;  %s2061_s11 = scalar_lea.hbm %s3086_s2, 128 }
  0x4b   : > { %p3147_p13 = pneg %p3146_p9  ;;  %p2062_p2 = scmp.lt.u32.totalorder %s2297_s20, %s3086_s2 }
  0x4c   : > { %p2063_p3 = scmp.lt.u32.totalorder %s2061_s11, %s2056_s22  ;;  %p2065_p12 = scmp.lt.u32.totalorder %s2056_s22, %s2297_s20 }
  0x4d   : > { %p2059_p8 = pnand %p2057_p7, %p3147_p13 }
  0x4e   : > { %p2064_p11 = por %p2063_p3, %p2062_p2 }
  0x4f   : > { %p2060_p6 = pneg %p2059_p8 }
  0x50   : > { %p2066_p10 = por %p2065_p12, %p2064_p11 }
  0x52   : > { %p2067_p0 = pnand %p2066_p10, %p2060_p6 }
  0x54   : > { %2070 = shalt.err (!%p2067_p0)
}
  0x55   : > { %s2071_s28 = scalar_lea.vmem %s2299_s23, 64  ;;  %p3148_p1 = pmov %p3147_p13 }
  0x56   : > { %p2072_p5 = scmp.ne.s32.totalorder %s2299_s23, %s2071_s28  ;;  %s2149_s10 = smov [#allocation8]  }
  0x57   : > { %s2076_s9 = sshll.u32 %s2149_s10, 4  ;;  %s2077_s9 = int_to_ptr.vmem [resolvable:$false] %s2076_s9 }
  0x58   : > { %p2074_p4 = pnand %p2072_p5, %p3148_p1  ;;  %s2078_s21 = scalar_lea.vmem %s2077_s9, 128 }
  0x59   : > { %p2079_p13 = scmp.lt.s32.totalorder %s2299_s23, %s2077_s9  ;;  %p2080_p8 = scmp.lt.s32.totalorder %s2078_s21, %s2071_s28 }
  0x5a   : > { %p2075_p7 = pneg %p2074_p4 }
  0x5b   : > { %p2081_p2 = por %p2080_p8, %p2079_p13 }
  0x5d   : > { %p2082_p3 = pnand %p2081_p2, %p2075_p7 }
  0x5f   : > { %2085 = shalt.err (!%p2082_p3)
}
  0x60   : > { %1687 = dma.hbm_to_vmem [thread:$0]  (!%p3146_p9), %s2297_s20, 64, %s2299_s23, %s2232_s5  }
  0x61   : > { %p3149_p6 = scmp.ne.s32.totalorder %s3144_s8, 0 }
  0x63   : > { %209 = sbr.rel (%p3149_p6) target bundleno = 910 (0x38e), region = 32 }
  0x6a   : > { %p3150_p11 = scmp.ne.s32.totalorder %s3142_s6, 0 }
  0x6c   : > { %2111 = dma.done.wait (%p3150_p11), [#allocation5], 1024  }
  0x6d   : > { %2113 = vsyncadd (%p3150_p11), [#allocation5], 4294966272  ;;  %s215_s25 = sand.u32 1, %s1607_s30   ;;  %s217_s26 = sand.u32 1, %s2124_s13  }
  0x6e   : > { %s1619_s29 = sshll.u32 %s217_s26, 8  ;;  %s216_s22 = scalar_lea.sflag [#allocation7], %s215_s25 }
  0x6f   : > { %s2355_s27 = scalar_lea.vmem [#allocation6], %s1619_s29  ;;  %p3151_p9 = scmp.ne.s32.totalorder %s3143_s7, 0 }
  0x71   : > { %2115 = dma.done.wait (%p3151_p9), %s216_s22, 4160  }
  0x72   : > { %2117 = vsyncadd (%p3151_p9), %s216_s22, 4294963136  ;;  %s2361_s5 = sshll.u32 %s217_s26, 2  ;;  %p1621_p12 = scmp.ne.s32.totalorder %s2132_s15, 0 }
  0x73   : > { %s228_s6 = scalar_lea.vmem [#allocation8], %s2361_s5  ;;  %vm270_vm0 = vcmask (!%p1621_p12), 7168   ;;  %v2150_v0 = vmov (!%p1621_p12), -1e+30   ;;  %v2151_v1 = vmov (!%p1621_p12), 0.0  }
  0x74   : > { %269 = sbr.rel (%p1621_p12) target bundleno = 132 (0x84), region = 48  ;;  %271 = vst.msk [vmem:[#allocation2] sm:$0xff] (!%p1621_p12), %vm270_vm0, %v2150_v0  ;;  %272 = vst.msk [vmem:[#allocation2 + $0x8] sm:$0xff] (!%p1621_p12), %vm270_vm0, %v2150_v0 }
  0x75   : > { %273 = vst.msk [vmem:[#allocation2 + $0x10] sm:$0xff] (!%p1621_p12), %vm270_vm0, %v2150_v0  ;;  %274 = vst.msk [vmem:[#allocation2 + $0x18] sm:$0xff] (!%p1621_p12), %vm270_vm0, %v2150_v0 }
  0x76   : > { %275 = vst.msk [vmem:[#allocation2 + $0x20] sm:$0xff] (!%p1621_p12), %vm270_vm0, %v2150_v0  ;;  %276 = vst.msk [vmem:[#allocation2 + $0x28] sm:$0xff] (!%p1621_p12), %vm270_vm0, %v2150_v0 }
  0x77   : > { %277 = vst.msk [vmem:[#allocation2 + $0x30] sm:$0xff] (!%p1621_p12), %vm270_vm0, %v2150_v0  ;;  %278 = vst.msk [vmem:[#allocation2 + $0x38] sm:$0xff] (!%p1621_p12), %vm270_vm0, %v2150_v0 }
  0x78   : > { %279 = vst.msk [vmem:[#allocation2 + $0x40] sm:$0xff] (!%p1621_p12), %vm270_vm0, %v2150_v0  ;;  %280 = vst.msk [vmem:[#allocation2 + $0x48] sm:$0xff] (!%p1621_p12), %vm270_vm0, %v2150_v0 }
  0x79   : > { %281 = vst.msk [vmem:[#allocation2 + $0x50] sm:$0xff] (!%p1621_p12), %vm270_vm0, %v2150_v0  ;;  %282 = vst.msk [vmem:[#allocation2 + $0x58] sm:$0xff] (!%p1621_p12), %vm270_vm0, %v2150_v0 }
  0x7a   : > { %283 = vst.msk [vmem:[#allocation2 + $0x60] sm:$0xff] (!%p1621_p12), %vm270_vm0, %v2150_v0  ;;  %284 = vst.msk [vmem:[#allocation2 + $0x68] sm:$0xff] (!%p1621_p12), %vm270_vm0, %v2150_v0 }
  0x7b   : > { %285 = vst.msk [vmem:[#allocation2 + $0x70] sm:$0xff] %vm270_vm0, %v2150_v0  ;;  %286 = vst.msk [vmem:[#allocation2 + $0x78] sm:$0xff] %vm270_vm0, %v2150_v0 }
  0x7c   : > { %287 = vst.msk [vmem:[#allocation3] sm:$0xff] %vm270_vm0, %v2151_v1  ;;  %288 = vst.msk [vmem:[#allocation3 + $0x8] sm:$0xff] %vm270_vm0, %v2151_v1 }
  0x7d   : > { %289 = vst.msk [vmem:[#allocation3 + $0x10] sm:$0xff] %vm270_vm0, %v2151_v1  ;;  %290 = vst.msk [vmem:[#allocation3 + $0x18] sm:$0xff] %vm270_vm0, %v2151_v1 }
  0x7e   : > { %291 = vst.msk [vmem:[#allocation3 + $0x20] sm:$0xff] %vm270_vm0, %v2151_v1  ;;  %292 = vst.msk [vmem:[#allocation3 + $0x28] sm:$0xff] %vm270_vm0, %v2151_v1 }
  0x7f   : > { %293 = vst.msk [vmem:[#allocation3 + $0x30] sm:$0xff] %vm270_vm0, %v2151_v1  ;;  %294 = vst.msk [vmem:[#allocation3 + $0x38] sm:$0xff] %vm270_vm0, %v2151_v1 }
  0x80   : > { %295 = vst.msk [vmem:[#allocation3 + $0x40] sm:$0xff] %vm270_vm0, %v2151_v1  ;;  %296 = vst.msk [vmem:[#allocation3 + $0x48] sm:$0xff] %vm270_vm0, %v2151_v1 }
  0x81   : > { %297 = vst.msk [vmem:[#allocation3 + $0x50] sm:$0xff] %vm270_vm0, %v2151_v1  ;;  %298 = vst.msk [vmem:[#allocation3 + $0x58] sm:$0xff] %vm270_vm0, %v2151_v1 }
  0x82   : > { %299 = vst.msk [vmem:[#allocation3 + $0x60] sm:$0xff] %vm270_vm0, %v2151_v1  ;;  %300 = vst.msk [vmem:[#allocation3 + $0x68] sm:$0xff] %vm270_vm0, %v2151_v1 }
  0x83   : > { %301 = vst.msk [vmem:[#allocation3 + $0x70] sm:$0xff] %vm270_vm0, %v2151_v1  ;;  %302 = vst.msk [vmem:[#allocation3 + $0x78] sm:$0xff] %vm270_vm0, %v2151_v1 }
  0x84 PF: > { %v1750_v2 = vld [vmem:[%s2355_s27 + $0x4] ss:$16 sps:$4 sm:$0xff]   ;;  %v1752_v3 = vld [vmem:[%s2355_s27 + $0xc] ss:$16 sps:$4 sm:$0xff]   ;;  %v2152_v4 = vmov 0   ;;  %v353_v43 = vlaneseq  ;;  %vm1367_vm1 = vcmask 7168  }
  0x85   : > { %613 = vmatprep.mubr.bf16.mxu0 %v2152_v4  ;;  %726 = vmatprep.mubr.bf16.mxu1 %v2152_v4  ;;  %v1754_v5 = vld [vmem:[%s2355_s27] ss:$16 sps:$4 sm:$0xff]   ;;  %v1755_v6 = vld [vmem:[%s2355_s27 + $0x8] ss:$16 sps:$4 sm:$0xff]   ;;  %v1756_v7 = vld [vmem:[%s2355_s27 + $0x24] ss:$16 sps:$4 sm:$0xff]  }
  0x86   : > { %581 = vmatprep.subr.bf16.mxu0 %v1750_v2  ;;  %1748 = vset.pattern.permute.xlu0 %v2152_v4  ;;  %v1758_v8 = vld [vmem:[%s2355_s27 + $0x2c] ss:$16 sps:$4 sm:$0xff]   ;;  %v1760_v9 = vld [vmem:[%s2355_s27 + $0x20] ss:$16 sps:$4 sm:$0xff]   ;;  %v1761_v10 = vld [vmem:[%s2355_s27 + $0x28] ss:$16 sps:$4 sm:$0xff]  }
  0x87   : > { %694 = vmatprep.subr.bf16.mxu1 %v1752_v3  ;;  %1749 = vset.pattern.permute.xlu1 %v2152_v4  ;;  %v1762_v11 = vld [vmem:[%s2355_s27 + $0x44] ss:$16 sps:$4 sm:$0xff]   ;;  %v1764_v12 = vld [vmem:[%s2355_s27 + $0x4c] ss:$16 sps:$4 sm:$0xff]   ;;  %v1766_v13 = vld [vmem:[%s2355_s27 + $0x40] ss:$16 sps:$4 sm:$0xff]  }
  0x88   : > { %582 = vmatpush1.bf16.msra.mxu0 %v1754_v5  ;;  %695 = vmatpush1.bf16.msra.mxu1 %v1755_v6  ;;  %v1767_v14 = vld [vmem:[%s2355_s27 + $0x48] ss:$16 sps:$4 sm:$0xff]   ;;  %v1768_v15 = vld [vmem:[%s2355_s27 + $0x64] ss:$16 sps:$4 sm:$0xff]   ;;  %v1770_v16 = vld [vmem:[%s2355_s27 + $0x6c] ss:$16 sps:$4 sm:$0xff]  }
  0x89   : > { %583 = vmatprep.subr.bf16.mxu0 %v1756_v7  ;;  %696 = vmatprep.subr.bf16.mxu1 %v1758_v8  ;;  %v1772_v17 = vld [vmem:[%s2355_s27 + $0x60] ss:$16 sps:$4 sm:$0xff]   ;;  %v1773_v18 = vld [vmem:[%s2355_s27 + $0x68] ss:$16 sps:$4 sm:$0xff]   ;;  %v1774_v19 = vld [vmem:[%s2355_s27 + $0x84] ss:$16 sps:$4 sm:$0xff]  }
  0x8a   : > { %v1776_v20 = vld [vmem:[%s2355_s27 + $0x8c] ss:$16 sps:$4 sm:$0xff]   ;;  %v1778_v21 = vld [vmem:[%s2355_s27 + $0x80] ss:$16 sps:$4 sm:$0xff]   ;;  %v1779_v22 = vld [vmem:[%s2355_s27 + $0x88] ss:$16 sps:$4 sm:$0xff]  }
  0x8b   : > { %v1780_v23 = vld [vmem:[%s2355_s27 + $0xa4] ss:$16 sps:$4 sm:$0xff]   ;;  %v1782_v24 = vld [vmem:[%s2355_s27 + $0xac] ss:$16 sps:$4 sm:$0xff]   ;;  %v1784_v25 = vld [vmem:[%s2355_s27 + $0xa0] ss:$16 sps:$4 sm:$0xff]  }
  0x8c   : > { %584 = vmatpush1.bf16.msra.mxu0 %v1760_v9  ;;  %697 = vmatpush1.bf16.msra.mxu1 %v1761_v10  ;;  %v1785_v26 = vld [vmem:[%s2355_s27 + $0xa8] ss:$16 sps:$4 sm:$0xff]   ;;  %v1786_v27 = vld [vmem:[%s2355_s27 + $0xc4] ss:$16 sps:$4 sm:$0xff]   ;;  %v1788_v28 = vld [vmem:[%s2355_s27 + $0xcc] ss:$16 sps:$4 sm:$0xff]  }
  0x8d   : > { %585 = vmatprep.subr.bf16.mxu0 %v1762_v11  ;;  %698 = vmatprep.subr.bf16.mxu1 %v1764_v12  ;;  %v1790_v29 = vld [vmem:[%s2355_s27 + $0xc0] ss:$16 sps:$4 sm:$0xff]   ;;  %v1791_v30 = vld [vmem:[%s2355_s27 + $0xc8] ss:$16 sps:$4 sm:$0xff]   ;;  %v1792_v31 = vld [vmem:[%s2355_s27 + $0xe4] ss:$16 sps:$4 sm:$0xff]  }
  0x8e   : > { %v1794_v32 = vld [vmem:[%s2355_s27 + $0xec] ss:$16 sps:$4 sm:$0xff]   ;;  %v1796_v33 = vld [vmem:[%s2355_s27 + $0xe0] ss:$16 sps:$4 sm:$0xff]   ;;  %v1797_v34 = vld [vmem:[%s2355_s27 + $0xe8] ss:$16 sps:$4 sm:$0xff]  }
  0x8f   : > { %v1798_v35 = vld [vmem:[#allocation4] sm:$0xff]   ;;  %v1799_v36 = vld [vmem:[#allocation4 + $0x8] sm:$0xff]   ;;  %v1800_v37 = vld [vmem:[#allocation4 + $0x10] sm:$0xff]   ;;  %v354_v44 = vshrl.u32 %v353_v43, 7  ;;  %p1662_p10 = scmp.ne.s32.totalorder %s2132_s15, 1 }
  0x90   : > { %586 = vmatpush1.bf16.msra.mxu0 %v1766_v13  ;;  %699 = vmatpush1.bf16.msra.mxu1 %v1767_v14  ;;  %v1801_v38 = vld [vmem:[#allocation4 + $0x18] sm:$0xff]   ;;  %v1802_v39 = vld [vmem:[#allocation4 + $0x20] sm:$0xff]   ;;  %v1803_v40 = vld [vmem:[#allocation4 + $0x28] sm:$0xff]  }
  0x91   : > { %587 = vmatprep.subr.bf16.mxu0 %v1768_v15  ;;  %700 = vmatprep.subr.bf16.mxu1 %v1770_v16  ;;  %v1804_v41 = vld [vmem:[#allocation4 + $0x30] sm:$0xff]   ;;  %v1805_v42 = vld [vmem:[#allocation4 + $0x38] sm:$0xff]   ;;  %v355_v45 = vsub.s32 0, %v354_v44  ;;  %v351_v46 = vld [vmem:[%s228_s6] sm:$0xf]  ;;  %v363_v47 = vsub.s32 2, %v354_v44 }
  0x92   : > { %v359_v48 = vsub.s32 1, %v354_v44  ;;  %v367_v52 = vsub.s32 3, %v354_v44 }
  0x93   : > { %v2449_v49 = vrot.slane %v351_v46, %v355_v45  ;;  %v2451_v50 = vrot.slane %v351_v46, %v363_v47 }
  0x94   : > { %588 = vmatpush1.bf16.msra.mxu0 %v1772_v17  ;;  %701 = vmatpush1.bf16.msra.mxu1 %v1773_v18  ;;  %v2453_v51 = vrot.slane %v351_v46, %v359_v48  ;;  %v2464_v60 = vrot.slane %v351_v46, %v367_v52 }
  0x95   : > { %589 = vmatprep.subr.bf16.mxu0 %v1774_v19  ;;  %702 = vmatprep.subr.bf16.mxu1 %v1776_v20 }
  0x98   : > { %590 = vmatpush1.bf16.msra.mxu0 %v1778_v21  ;;  %703 = vmatpush1.bf16.msra.mxu1 %v1779_v22 }
  0x99   : > { %591 = vmatprep.subr.bf16.mxu0 %v1780_v23  ;;  %704 = vmatprep.subr.bf16.mxu1 %v1782_v24 }
  0x9c   : > { %592 = vmatpush1.bf16.msra.mxu0 %v1784_v25  ;;  %705 = vmatpush1.bf16.msra.mxu1 %v1785_v26 }
  0x9d   : > { %593 = vmatprep.subr.bf16.mxu0 %v1786_v27  ;;  %706 = vmatprep.subr.bf16.mxu1 %v1788_v28 }
  0xa0   : > { %594 = vmatpush1.bf16.msra.mxu0 %v1790_v29  ;;  %707 = vmatpush1.bf16.msra.mxu1 %v1791_v30 }
  0xa1   : > { %595 = vmatprep.subr.bf16.mxu0 %v1792_v31  ;;  %708 = vmatprep.subr.bf16.mxu1 %v1794_v32 }
  0xa4   : > { %596 = vmatpush1.bf16.msra.mxu0 %v1796_v33  ;;  %709 = vmatpush1.bf16.msra.mxu1 %v1797_v34 }
  0xa7   : > { %614 = vmatmul.mubr.bf16.vlgmr.msra.gmra.mrb[0].mxu0 %v1798_v35  ;;  %727 = vmatmul.mubr.bf16.vlgmr.msra.gmra.mrb[0].mxu1 %v1798_v35 }
  0xa8   : > { %623 = vmatprep.mubr.bf16.mxu0 %v2152_v4  ;;  %736 = vmatprep.mubr.bf16.mxu1 %v2152_v4 }
  0xaf   : > { %624 = vmatmul.mubr.bf16.gmra.mrb[4].mxu0 %v1799_v36  ;;  %737 = vmatmul.mubr.bf16.gmra.mrb[4].mxu1 %v1799_v36 }
  0xb0   : > { %633 = vmatprep.mubr.bf16.mxu0 %v2152_v4  ;;  %746 = vmatprep.mubr.bf16.mxu1 %v2152_v4 }
  0xb7   : > { %634 = vmatmul.mubr.bf16.gmra.mrb[8].mxu0 %v1800_v37  ;;  %747 = vmatmul.mubr.bf16.gmra.mrb[8].mxu1 %v1800_v37 }
  0xb8   : > { %643 = vmatprep.mubr.bf16.mxu0 %v2152_v4  ;;  %756 = vmatprep.mubr.bf16.mxu1 %v2152_v4 }
  0xbf   : > { %644 = vmatmul.mubr.bf16.gmra.mrb[12].mxu0 %v1801_v38  ;;  %757 = vmatmul.mubr.bf16.gmra.mrb[12].mxu1 %v1801_v38 }
  0xc0   : > { %653 = vmatprep.mubr.bf16.mxu0 %v2152_v4  ;;  %766 = vmatprep.mubr.bf16.mxu1 %v2152_v4 }
  0xc7   : > { %654 = vmatmul.mubr.bf16.gmra.mrb[16].mxu0 %v1802_v39  ;;  %767 = vmatmul.mubr.bf16.gmra.mrb[16].mxu1 %v1802_v39 }
  0xc8   : > { %663 = vmatprep.mubr.bf16.mxu0 %v2152_v4  ;;  %776 = vmatprep.mubr.bf16.mxu1 %v2152_v4 }
  0xcf   : > { %664 = vmatmul.mubr.bf16.gmra.mrb[20].mxu0 %v1803_v40  ;;  %777 = vmatmul.mubr.bf16.gmra.mrb[20].mxu1 %v1803_v40 }
  0xd0   : > { %673 = vmatprep.mubr.bf16.mxu0 %v2152_v4  ;;  %786 = vmatprep.mubr.bf16.mxu1 %v2152_v4 }
  0xd7   : > { %674 = vmatmul.mubr.bf16.gmra.mrb[24].mxu0 %v1804_v41  ;;  %787 = vmatmul.mubr.bf16.gmra.mrb[24].mxu1 %v1804_v41 }
  0xd8   : > { %683 = vmatprep.mubr.bf16.mxu0 %v2152_v4  ;;  %796 = vmatprep.mubr.bf16.mxu1 %v2152_v4 }
  0xdf   : > { %684 = vmatmul.mubr.bf16.gmra.mrb[28].mxu0 %v1805_v42  ;;  %797 = vmatmul.mubr.bf16.gmra.mrb[28].mxu1 %v1805_v42 }
 0x17a   : > { %v615_v53 = vpop.f32.mrb[0].mxu0  ;;  %v728_v54 = vpop.f32.mrb[0].mxu1 }
 0x17b   : > { %v2456_v55 = vadd.f32 %v615_v53, %v2449_v49  ;;  %v617_v56 = vpop.f32.mrb[1].mxu0  ;;  %v730_v57 = vpop.f32.mrb[1].mxu1  ;;  %v2459_v58 = vadd.f32 %v728_v54, %v2451_v50 }
 0x17c   : > { %v2462_v59 = vadd.f32 %v617_v56, %v2453_v51  ;;  %v619_v61 = vpop.f32.mrb[2].mxu0  ;;  %v732_v62 = vpop.f32.mrb[2].mxu1  ;;  %v2475_v4 = vadd.f32 %v730_v57, %v2464_v60 }
 0x17d   : > { %v2467_v63 = vadd.f32 %v619_v61, %v2449_v49  ;;  %v621_v0 = vpop.f32.mrb[3].mxu0  ;;  %v734_v1 = vpop.f32.mrb[3].mxu1  ;;  %v2478_v5 = vadd.f32 %v732_v62, %v2451_v50 }
 0x17e   : > { %v823_v2 = vmax.f32 %v2456_v55, %v2462_v59  ;;  %v2472_v3 = vadd.f32 %v621_v0, %v2453_v51  ;;  %v2489_v15 = vadd.f32 %v734_v1, %v2464_v60 }
 0x180   : > { %v828_v6 = vmax.f32 %v2467_v63, %v2472_v3  ;;  %v824_v7 = vmax.f32 %v823_v2, %v2459_v58 }
 0x182   : > { %v625_v8 = vpop.f32.mrb[4].mxu0  ;;  %v738_v9 = vpop.f32.mrb[4].mxu1  ;;  %v825_v10 = vmax.f32 %v824_v7, %v2475_v4  ;;  %v829_v11 = vmax.f32 %v828_v6, %v2478_v5 }
 0x183   : > { %v2486_v12 = vadd.f32 %v625_v8, %v2449_v49  ;;  %v627_v13 = vpop.f32.mrb[5].mxu0  ;;  %v740_v14 = vpop.f32.mrb[5].mxu1  ;;  %v2492_v16 = vadd.f32 %v738_v9, %v2451_v50 }
 0x184   : > { %v2495_v17 = vadd.f32 %v627_v13, %v2453_v51  ;;  %v629_v18 = vpop.f32.mrb[6].mxu0  ;;  %v742_v19 = vpop.f32.mrb[6].mxu1  ;;  %826 = vmax.xlane.f32.xlu0 %v825_v10  ;;  %v830_v25 = vmax.f32 %v829_v11, %v2489_v15  ;;  %v2507_v26 = vadd.f32 %v740_v14, %v2464_v60 }
 0x185   : > { %v2498_v20 = vadd.f32 %v629_v18, %v2449_v49  ;;  %v631_v21 = vpop.f32.mrb[7].mxu0  ;;  %v744_v22 = vpop.f32.mrb[7].mxu1  ;;  %v2510_v27 = vadd.f32 %v742_v19, %v2451_v50 }
 0x186   : > { %v833_v23 = vmax.f32 %v2486_v12, %v2495_v17  ;;  %v2503_v24 = vadd.f32 %v631_v21, %v2453_v51  ;;  %v2521_v37 = vadd.f32 %v744_v22, %v2464_v60 }
 0x188   : > { %v838_v28 = vmax.f32 %v2498_v20, %v2503_v24  ;;  %831 = vmax.xlane.f32.xlu0 %v830_v25  ;;  %v834_v29 = vmax.f32 %v833_v23, %v2492_v16 }
 0x18a   : > { %v635_v30 = vpop.f32.mrb[8].mxu0  ;;  %v748_v31 = vpop.f32.mrb[8].mxu1  ;;  %v835_v32 = vmax.f32 %v834_v29, %v2507_v26  ;;  %v839_v33 = vmax.f32 %v838_v28, %v2510_v27 }
 0x18b   : > { %v2518_v34 = vadd.f32 %v635_v30, %v2449_v49  ;;  %v637_v35 = vpop.f32.mrb[9].mxu0  ;;  %v750_v36 = vpop.f32.mrb[9].mxu1  ;;  %v2524_v38 = vadd.f32 %v748_v31, %v2451_v50 }
 0x18c   : > { %v2527_v39 = vadd.f32 %v637_v35, %v2453_v51  ;;  %v639_v40 = vpop.f32.mrb[10].mxu0  ;;  %v752_v41 = vpop.f32.mrb[10].mxu1  ;;  %836 = vmax.xlane.f32.xlu1 %v835_v32  ;;  %v840_v47 = vmax.f32 %v839_v33, %v2521_v37  ;;  %v2539_v48 = vadd.f32 %v750_v36, %v2464_v60 }
 0x18d   : > { %v2530_v42 = vadd.f32 %v639_v40, %v2449_v49  ;;  %v641_v43 = vpop.f32.mrb[11].mxu0  ;;  %v754_v44 = vpop.f32.mrb[11].mxu1  ;;  %v2542_v52 = vadd.f32 %v752_v41, %v2451_v50 }
 0x18e   : > { %v843_v45 = vmax.f32 %v2518_v34, %v2527_v39  ;;  %v2535_v46 = vadd.f32 %v641_v43, %v2453_v51  ;;  %v2548_v56 = vadd.f32 %v754_v44, %v2464_v60 }
 0x190   : > { %v848_v53 = vmax.f32 %v2530_v42, %v2535_v46  ;;  %841 = vmax.xlane.f32.xlu1 %v840_v47  ;;  %v844_v54 = vmax.f32 %v843_v45, %v2524_v38 }
 0x192   : > { %v645_v57 = vpop.f32.mrb[12].mxu0  ;;  %v758_v61 = vpop.f32.mrb[12].mxu1  ;;  %v845_v62 = vmax.f32 %v844_v54, %v2539_v48  ;;  %v849_v0 = vmax.f32 %v848_v53, %v2542_v52 }
 0x193   : > { %v2553_v1 = vadd.f32 %v645_v57, %v2449_v49  ;;  %v647_v2 = vpop.f32.mrb[13].mxu0  ;;  %v760_v6 = vpop.f32.mrb[13].mxu1  ;;  %v2556_v7 = vadd.f32 %v758_v61, %v2451_v50 }
 0x194   : > { %v2559_v8 = vadd.f32 %v647_v2, %v2453_v51  ;;  %v649_v9 = vpop.f32.mrb[14].mxu0  ;;  %v762_v10 = vpop.f32.mrb[14].mxu1  ;;  %846 = vmax.xlane.f32.xlu0 %v845_v62  ;;  %v850_v11 = vmax.f32 %v849_v0, %v2548_v56  ;;  %v2571_v22 = vadd.f32 %v760_v6, %v2464_v60 }
 0x195   : > { %v2563_v13 = vadd.f32 %v649_v9, %v2449_v49  ;;  %v651_v14 = vpop.f32.mrb[15].mxu0  ;;  %v764_v18 = vpop.f32.mrb[15].mxu1  ;;  %v2574_v23 = vadd.f32 %v762_v10, %v2451_v50 }
 0x196   : > { %v853_v19 = vmax.f32 %v2553_v1, %v2559_v8  ;;  %v2568_v21 = vadd.f32 %v651_v14, %v2453_v51  ;;  %851 = vmax.xlane.f32.xlu1 %v850_v11  ;;  %v2580_v29 = vadd.f32 %v764_v18, %v2464_v60 }
 0x198   : > { %v858_v25 = vmax.f32 %v2563_v13, %v2568_v21  ;;  %v854_v28 = vmax.f32 %v853_v19, %v2556_v7 }
 0x19a   : > { %v655_v30 = vpop.f32.mrb[16].mxu0  ;;  %v768_v31 = vpop.f32.mrb[16].mxu1  ;;  %v855_v32 = vmax.f32 %v854_v28, %v2571_v22  ;;  %v859_v33 = vmax.f32 %v858_v25, %v2574_v23 }
 0x19b   : > { %v2585_v35 = vadd.f32 %v655_v30, %v2449_v49  ;;  %v657_v36 = vpop.f32.mrb[17].mxu0  ;;  %v770_v40 = vpop.f32.mrb[17].mxu1  ;;  %v2588_v41 = vadd.f32 %v768_v31, %v2451_v50 }
 0x19c   : > { %v2591_v43 = vadd.f32 %v657_v36, %v2453_v51  ;;  %v659_v44 = vpop.f32.mrb[18].mxu0  ;;  %v772_v45 = vpop.f32.mrb[18].mxu1  ;;  %856 = vmax.xlane.f32.xlu0 %v855_v32  ;;  %v860_v47 = vmax.f32 %v859_v33, %v2580_v29  ;;  %v2603_v0 = vadd.f32 %v770_v40, %v2464_v60 }
 0x19d   : > { %v2595_v53 = vadd.f32 %v659_v44, %v2449_v49  ;;  %v661_v54 = vpop.f32.mrb[19].mxu0  ;;  %v774_v57 = vpop.f32.mrb[19].mxu1  ;;  %v2606_v2 = vadd.f32 %v772_v45, %v2451_v50 }
 0x19e   : > { %v863_v61 = vmax.f32 %v2585_v35, %v2591_v43  ;;  %v2600_v62 = vadd.f32 %v661_v54, %v2453_v51  ;;  %861 = vmax.xlane.f32.xlu1 %v860_v47  ;;  %v2612_v10 = vadd.f32 %v774_v57, %v2464_v60 }
 0x1a0   : > { %v868_v6 = vmax.f32 %v2595_v53, %v2600_v62  ;;  %v864_v9 = vmax.f32 %v863_v61, %v2588_v41 }
 0x1a2   : > { %v665_v11 = vpop.f32.mrb[20].mxu0  ;;  %v778_v14 = vpop.f32.mrb[20].mxu1  ;;  %v865_v18 = vmax.f32 %v864_v9, %v2603_v0  ;;  %v869_v19 = vmax.f32 %v868_v6, %v2606_v2 }
 0x1a3   : > { %v2617_v25 = vadd.f32 %v665_v11, %v2449_v49  ;;  %v667_v28 = vpop.f32.mrb[21].mxu0  ;;  %v780_v30 = vpop.f32.mrb[21].mxu1  ;;  %v2620_v31 = vadd.f32 %v778_v14, %v2451_v50 }
 0x1a4   : > { %v2623_v32 = vadd.f32 %v667_v28, %v2453_v51  ;;  %v669_v33 = vpop.f32.mrb[22].mxu0  ;;  %v782_v36 = vpop.f32.mrb[22].mxu1  ;;  %866 = vmax.xlane.f32.xlu0 %v865_v18  ;;  %v870_v40 = vmax.f32 %v869_v19, %v2612_v10  ;;  %v2635_v61 = vadd.f32 %v780_v30, %v2464_v60 }
 0x1a5   : > { %3152 = vst [vmem:[#allocation11_spill] sm:$0xff] %v2620_v31  ;;  %v2627_v44 = vadd.f32 %v669_v33, %v2449_v49  ;;  %v671_v45 = vpop.f32.mrb[23].mxu0  ;;  %v784_v47 = vpop.f32.mrb[23].mxu1  ;;  %v2638_v6 = vadd.f32 %v782_v36, %v2451_v50 }
 0x1a6   : > { %v873_v54 = vmax.f32 %v2617_v25, %v2623_v32  ;;  %v2632_v57 = vadd.f32 %v671_v45, %v2453_v51  ;;  %871 = vmax.xlane.f32.xlu1 %v870_v40  ;;  %3155 = vst [vmem:[#allocation14_spill] sm:$0xff] %v2635_v61  ;;  %v2644_v14 = vadd.f32 %v784_v47, %v2464_v60 }
 0x1a7   : > { %3153 = vst [vmem:[#allocation12_spill] sm:$0xff] %v2627_v44  ;;  %3156 = vst [vmem:[#allocation15_spill] sm:$0xff] %v2638_v6 }
 0x1a8   : > { %3154 = vst [vmem:[#allocation13_spill] sm:$0xff] %v2632_v57  ;;  %v878_v9 = vmax.f32 %v2627_v44, %v2632_v57  ;;  %v874_v11 = vmax.f32 %v873_v54, %v2620_v31  ;;  %3157 = vst [vmem:[#allocation16_spill] sm:$0xff] %v2644_v14 }
 0x1aa   : > { %v675_v18 = vpop.f32.mrb[24].mxu0  ;;  %v788_v19 = vpop.f32.mrb[24].mxu1  ;;  %v875_v28 = vmax.f32 %v874_v11, %v2635_v61  ;;  %v879_v33 = vmax.f32 %v878_v9, %v2638_v6 }
 0x1ab   : > { %v2649_v30 = vadd.f32 %v675_v18, %v2449_v49  ;;  %v677_v40 = vpop.f32.mrb[25].mxu0  ;;  %v790_v36 = vpop.f32.mrb[25].mxu1  ;;  %v2652_v45 = vadd.f32 %v788_v19, %v2451_v50 }
 0x1ac   : > { %v2655_v57 = vadd.f32 %v677_v40, %v2453_v51  ;;  %v679_v54 = vpop.f32.mrb[26].mxu0  ;;  %v792_v47 = vpop.f32.mrb[26].mxu1  ;;  %876 = vmax.xlane.f32.xlu0 %v875_v28  ;;  %v880_v44 = vmax.f32 %v879_v33, %v2644_v14  ;;  %v2667_v19 = vadd.f32 %v790_v36, %v2464_v60 }
 0x1ad   : > { %3158 = vst [vmem:[#allocation17_spill] sm:$0xff] %v2649_v30  ;;  %v2659_v11 = vadd.f32 %v679_v54, %v2449_v49  ;;  %v681_v9 = vpop.f32.mrb[27].mxu0  ;;  %v794_v6 = vpop.f32.mrb[27].mxu1  ;;  %v2670_v40 = vadd.f32 %v792_v47, %v2451_v50 }
 0x1ae   : > { %3159 = vst [vmem:[#allocation18_spill] sm:$0xff] %v2655_v57  ;;  %v883_v18 = vmax.f32 %v2649_v30, %v2655_v57  ;;  %v2664_v61 = vadd.f32 %v681_v9, %v2453_v51  ;;  %881 = vmax.xlane.f32.xlu1 %v880_v44  ;;  %3162 = vst [vmem:[#allocation21_spill] sm:$0xff] %v2667_v19  ;;  %v2676_v54 = vadd.f32 %v794_v6, %v2464_v60 }
 0x1af   : > { %3160 = vst [vmem:[#allocation19_spill] sm:$0xff] %v2659_v11  ;;  %3163 = vst [vmem:[#allocation22_spill] sm:$0xff] %v2670_v40 }
 0x1b0   : > { %3161 = vst [vmem:[#allocation20_spill] sm:$0xff] %v2664_v61  ;;  %v888_v28 = vmax.f32 %v2659_v11, %v2664_v61  ;;  %v884_v33 = vmax.f32 %v883_v18, %v2652_v45 }
 0x1b2   : > { %v685_v14 = vpop.f32.mrb[28].mxu0  ;;  %v798_v57 = vpop.f32.mrb[28].mxu1  ;;  %v885_v9 = vmax.f32 %v884_v33, %v2667_v19  ;;  %v889_v44 = vmax.f32 %v888_v28, %v2670_v40 }
 0x1b3   : > { %v2681_v36 = vadd.f32 %v685_v14, %v2449_v49  ;;  %v687_v30 = vpop.f32.mrb[29].mxu0  ;;  %v800_v47 = vpop.f32.mrb[29].mxu1  ;;  %v2684_v31 = vadd.f32 %v798_v57, %v2451_v50 }
 0x1b4   : > { %v2687_v61 = vadd.f32 %v687_v30, %v2453_v51  ;;  %v689_v18 = vpop.f32.mrb[30].mxu0  ;;  %v802_v6 = vpop.f32.mrb[30].mxu1  ;;  %886 = vmax.xlane.f32.xlu0 %v885_v9  ;;  %v890_v11 = vmax.f32 %v889_v44, %v2676_v54  ;;  %v2699_v57 = vadd.f32 %v800_v47, %v2464_v60  ;;  %v2713_v47 = vld [vmem:[#allocation2] sm:$0xff] }
 0x1b5   : > { %v2691_v33 = vadd.f32 %v689_v18, %v2449_v49  ;;  %v691_v28 = vpop.f32.mrb[31].mxu0  ;;  %v804_v40 = vpop.f32.mrb[31].mxu1  ;;  %v2702_v30 = vadd.f32 %v802_v6, %v2451_v50  ;;  %3166 = vst [vmem:[#allocation25_spill] sm:$0xff] %v2713_v47 }
 0x1b6   : > { %v893_v14 = vmax.f32 %v2681_v36, %v2687_v61  ;;  %v2696_v19 = vadd.f32 %v691_v28, %v2453_v51  ;;  %891 = vmax.xlane.f32.xlu1 %v890_v11  ;;  %v2708_v44 = vadd.f32 %v804_v40, %v2464_v60  ;;  %v2718_v28 = vld [vmem:[#allocation2 + $0x8] sm:$0xff]  ;;  %v2748_v60 = vld [vmem:[#allocation2 + $0x20] sm:$0xff] }
 0x1b7   : > { %3164 = vst [vmem:[#allocation23_spill] sm:$0xff] %v2702_v30  ;;  %3168 = vst [vmem:[#allocation27_spill] sm:$0xff] %v2718_v28 }
 0x1b8   : > { %v898_v9 = vmax.f32 %v2691_v33, %v2696_v19  ;;  %v894_v49 = vmax.f32 %v893_v14, %v2684_v31  ;;  %3165 = vst [vmem:[#allocation24_spill] sm:$0xff] %v2708_v44  ;;  %3174 = vst [vmem:[#allocation33_spill] sm:$0xff] %v2748_v60 }
 0x1ba   : > { %v895_v18 = vmax.f32 %v894_v49, %v2699_v57  ;;  %v899_v51 = vmax.f32 %v898_v9, %v2702_v30  ;;  %v2728_v9 = vld [vmem:[#allocation2 + $0x10] sm:$0xff] }
 0x1bb   : > { %3170 = vst [vmem:[#allocation29_spill] sm:$0xff] %v2728_v9 }
 0x1bc   : > { %896 = vmax.xlane.f32.xlu0 %v895_v18  ;;  %v900_v11 = vmax.f32 %v899_v51, %v2708_v44 }
 0x1be   : > { %901 = vmax.xlane.f32.xlu1 %v900_v11  ;;  %v2738_v11 = vld [vmem:[#allocation2 + $0x18] sm:$0xff] }
 0x1bf   : > { %3172 = vst [vmem:[#allocation31_spill] sm:$0xff] %v2738_v11 }
 0x211   : > { %v827_v50 = vpop.xlane.xlu0 %826 }
 0x212   : > { %v2716_v6 = vmax.f32 %v2713_v47, %v827_v50 }
 0x214   : > { %3167 = vst [vmem:[#allocation26_spill] sm:$0xff] %v2716_v6  ;;  %1384 = vst.msk [vmem:[#allocation2] sm:$0xff] %vm1367_vm1, %v2716_v6  ;;  %1001 = vperm.xlu0 %1748, %v2716_v6  }
 0x215   : > { %v832_v40 = vpop.xlane.xlu0 %831 }
 0x216   : > { %v2726_v14 = vmax.f32 %v2718_v28, %v832_v40 }
 0x218   : > { %3169 = vst [vmem:[#allocation28_spill] sm:$0xff] %v2726_v14  ;;  %1385 = vst.msk [vmem:[#allocation2 + $0x8] sm:$0xff] %vm1367_vm1, %v2726_v14  ;;  %1006 = vperm.xlu1 %1749, %v2726_v14  }
 0x219   : > { %v837_v18 = vpop.xlane.xlu1 %836 }
 0x21a   : > { %v2736_v51 = vmax.f32 %v2728_v9, %v837_v18  ;;  %v2755_v9 = vld [vmem:[#allocation2 + $0x28] sm:$0xff] }
 0x21b   : > { %3175 = vst [vmem:[#allocation34_spill] sm:$0xff] %v2755_v9 }
 0x21c   : > { %3171 = vst [vmem:[#allocation30_spill] sm:$0xff] %v2736_v51  ;;  %1386 = vst.msk [vmem:[#allocation2 + $0x10] sm:$0xff] %vm1367_vm1, %v2736_v51  ;;  %1011 = vperm.xlu1 %1749, %v2736_v51  }
 0x21d   : > { %v842_v40 = vpop.xlane.xlu1 %841 }
 0x21e   : > { %v2746_v49 = vmax.f32 %v2738_v11, %v842_v40  ;;  %v2775_v40 = vld [vmem:[#allocation2 + $0x38] sm:$0xff] }
 0x21f   : > { %3179 = vst [vmem:[#allocation38_spill] sm:$0xff] %v2775_v40 }
 0x220   : > { %3173 = vst [vmem:[#allocation32_spill] sm:$0xff] %v2746_v49  ;;  %1387 = vst.msk [vmem:[#allocation2 + $0x18] sm:$0xff] %vm1367_vm1, %v2746_v49  ;;  %1016 = vperm.xlu1 %1749, %v2746_v49  }
 0x221   : > { %v847_v50 = vpop.xlane.xlu0 %846 }
 0x222   : > { %v2758_v14 = vmax.f32 %v2748_v60, %v847_v50  ;;  %v2772_v50 = vld [vmem:[#allocation2 + $0x30] sm:$0xff] }
 0x223   : > { %v852_v51 = vpop.xlane.xlu1 %851  ;;  %3178 = vst [vmem:[#allocation37_spill] sm:$0xff] %v2772_v50 }
 0x224   : > { %3176 = vst [vmem:[#allocation35_spill] sm:$0xff] %v2758_v14  ;;  %1388 = vst.msk [vmem:[#allocation2 + $0x20] sm:$0xff] %vm1367_vm1, %v2758_v14  ;;  %v2765_v18 = vmax.f32 %v2755_v9, %v852_v51  ;;  %1021 = vperm.xlu1 %1749, %v2758_v14   ;;  %v2795_v14 = vld [vmem:[#allocation2 + $0x48] sm:$0xff] }
 0x225   : > { %3183 = vst [vmem:[#allocation42_spill] sm:$0xff] %v2795_v14 }
 0x226   : > { %3177 = vst [vmem:[#allocation36_spill] sm:$0xff] %v2765_v18  ;;  %1389 = vst.msk [vmem:[#allocation2 + $0x28] sm:$0xff] %vm1367_vm1, %v2765_v18 }
 0x228   : > { %1026 = vperm.xlu1 %1749, %v2765_v18  }
 0x229   : > { %v857_v11 = vpop.xlane.xlu0 %856 }
 0x22a   : > { %v2778_v60 = vmax.f32 %v2772_v50, %v857_v11  ;;  %v2792_v11 = vld [vmem:[#allocation2 + $0x40] sm:$0xff] }
 0x22b   : > { %v862_v51 = vpop.xlane.xlu1 %861  ;;  %3182 = vst [vmem:[#allocation41_spill] sm:$0xff] %v2792_v11 }
 0x22c   : > { %3180 = vst [vmem:[#allocation39_spill] sm:$0xff] %v2778_v60  ;;  %1390 = vst.msk [vmem:[#allocation2 + $0x30] sm:$0xff] %vm1367_vm1, %v2778_v60  ;;  %v2785_v49 = vmax.f32 %v2775_v40, %v862_v51  ;;  %1031 = vperm.xlu1 %1749, %v2778_v60   ;;  %v2815_v60 = vld [vmem:[#allocation2 + $0x58] sm:$0xff] }
 0x22d   : > { %3187 = vst [vmem:[#allocation46_spill] sm:$0xff] %v2815_v60 }
 0x22e   : > { %3181 = vst [vmem:[#allocation40_spill] sm:$0xff] %v2785_v49  ;;  %1391 = vst.msk [vmem:[#allocation2 + $0x38] sm:$0xff] %vm1367_vm1, %v2785_v49 }
 0x230   : > { %1036 = vperm.xlu1 %1749, %v2785_v49  }
 0x231   : > { %v867_v9 = vpop.xlane.xlu0 %866 }
 0x232   : > { %v2798_v50 = vmax.f32 %v2792_v11, %v867_v9  ;;  %v2813_v9 = vld [vmem:[#allocation2 + $0x50] sm:$0xff] }
 0x233   : > { %v872_v51 = vpop.xlane.xlu1 %871  ;;  %3186 = vst [vmem:[#allocation45_spill] sm:$0xff] %v2813_v9 }
 0x234   : > { %3184 = vst [vmem:[#allocation43_spill] sm:$0xff] %v2798_v50  ;;  %1392 = vst.msk [vmem:[#allocation2 + $0x40] sm:$0xff] %vm1367_vm1, %v2798_v50  ;;  %v2805_v18 = vmax.f32 %v2795_v14, %v872_v51  ;;  %1041 = vperm.xlu1 %1749, %v2798_v50   ;;  %v2835_v50 = vld [vmem:[#allocation2 + $0x68] sm:$0xff] }
 0x235   : > { %3191 = vst [vmem:[#allocation50_spill] sm:$0xff] %v2835_v50 }
 0x236   : > { %3185 = vst [vmem:[#allocation44_spill] sm:$0xff] %v2805_v18  ;;  %1393 = vst.msk [vmem:[#allocation2 + $0x48] sm:$0xff] %vm1367_vm1, %v2805_v18  ;;  %1046 = vperm.xlu0 %1748, %v2805_v18  }
 0x239   : > { %v877_v40 = vpop.xlane.xlu0 %876 }
 0x23a   : > { %v2818_v11 = vmax.f32 %v2813_v9, %v877_v40  ;;  %v2833_v40 = vld [vmem:[#allocation2 + $0x60] sm:$0xff] }
 0x23b   : > { %v882_v51 = vpop.xlane.xlu1 %881  ;;  %3190 = vst [vmem:[#allocation49_spill] sm:$0xff] %v2833_v40 }
 0x23c   : > { %3188 = vst [vmem:[#allocation47_spill] sm:$0xff] %v2818_v11  ;;  %1394 = vst.msk [vmem:[#allocation2 + $0x50] sm:$0xff] %vm1367_vm1, %v2818_v11  ;;  %v2825_v49 = vmax.f32 %v2815_v60, %v882_v51  ;;  %1051 = vperm.xlu1 %1749, %v2818_v11   ;;  %v2855_v11 = vld [vmem:[#allocation2 + $0x78] sm:$0xff] }
 0x23d   : > { %3195 = vst [vmem:[#allocation54_spill] sm:$0xff] %v2855_v11 }
 0x23e   : > { %3189 = vst [vmem:[#allocation48_spill] sm:$0xff] %v2825_v49  ;;  %1395 = vst.msk [vmem:[#allocation2 + $0x58] sm:$0xff] %vm1367_vm1, %v2825_v49  ;;  %1056 = vperm.xlu0 %1748, %v2825_v49  }
 0x241   : > { %v887_v14 = vpop.xlane.xlu0 %886 }
 0x242   : > { %v2838_v9 = vmax.f32 %v2833_v40, %v887_v14  ;;  %v2853_v14 = vld [vmem:[#allocation2 + $0x70] sm:$0xff] }
 0x243   : > { %v892_v51 = vpop.xlane.xlu1 %891  ;;  %3194 = vst [vmem:[#allocation53_spill] sm:$0xff] %v2853_v14 }
 0x244   : > { %3192 = vst [vmem:[#allocation51_spill] sm:$0xff] %v2838_v9  ;;  %1396 = vst.msk [vmem:[#allocation2 + $0x60] sm:$0xff] %vm1367_vm1, %v2838_v9  ;;  %v2845_v18 = vmax.f32 %v2835_v50, %v892_v51  ;;  %1061 = vperm.xlu1 %1749, %v2838_v9  }
 0x246   : > { %3193 = vst [vmem:[#allocation52_spill] sm:$0xff] %v2845_v18  ;;  %1397 = vst.msk [vmem:[#allocation2 + $0x68] sm:$0xff] %vm1367_vm1, %v2845_v18  ;;  %1066 = vperm.xlu0 %1748, %v2845_v18  }
 0x249   : > { %v897_v60 = vpop.xlane.xlu0 %896 }
 0x24a   : > { %v2858_v40 = vmax.f32 %v2853_v14, %v897_v60 }
 0x24b   : > { %v902_v51 = vpop.xlane.xlu1 %901 }
 0x24c   : > { %3196 = vst [vmem:[#allocation55_spill] sm:$0xff] %v2858_v40  ;;  %1398 = vst.msk [vmem:[#allocation2 + $0x70] sm:$0xff] %vm1367_vm1, %v2858_v40  ;;  %v2865_v49 = vmax.f32 %v2855_v11, %v902_v51  ;;  %1071 = vperm.xlu1 %1749, %v2858_v40  }
 0x24e   : > { %3197 = vst [vmem:[#allocation56_spill] sm:$0xff] %v2865_v49  ;;  %1399 = vst.msk [vmem:[#allocation2 + $0x78] sm:$0xff] %vm1367_vm1, %v2865_v49  ;;  %1076 = vperm.xlu0 %1748, %v2865_v49  }
 0x293   : > { %v1002_v60 = vpop.permute.xlu0 %1001 }
 0x294   : > { %v1079_v50 = vsub.f32 %v2456_v55, %v1002_v60  ;;  %v1080_v9 = vsub.f32 %v2462_v59, %v1002_v60  ;;  %v1081_v14 = vsub.f32 %v2459_v58, %v1002_v60  ;;  %v1082_v51 = vsub.f32 %v2475_v4, %v1002_v60 }
 0x296   : > { %v1143_v28 = vmul.f32 1.442695, %v1079_v50  ;;  %v1145_v6 = vmul.f32 1.442695, %v1080_v9  ;;  %v1147_v40 = vmul.f32 1.442695, %v1081_v14 }
 0x297   : > { %v1149_v47 = vmul.f32 1.442695, %v1082_v51  ;;  %v1007_v44 = vpop.permute.xlu1 %1006 }
 0x298   : > { %1806 = vpow2.f32 %v1143_v28  ;;  %v1083_v18 = vsub.f32 %v2467_v63, %v1007_v44  ;;  %v1084_v11 = vsub.f32 %v2472_v3, %v1007_v44  ;;  %v1085_v49 = vsub.f32 %v2478_v5, %v1007_v44 }
 0x299   : > { %1808 = vpow2.f32 %v1145_v6  ;;  %v1086_v55 = vsub.f32 %v2489_v15, %v1007_v44 }
 0x29a   : > { %1810 = vpow2.f32 %v1147_v40  ;;  %v1151_v59 = vmul.f32 1.442695, %v1083_v18  ;;  %v1153_v58 = vmul.f32 1.442695, %v1084_v11  ;;  %v1155_v30 = vmul.f32 1.442695, %v1085_v49 }
 0x29b   : > { %1812 = vpow2.f32 %v1149_v47  ;;  %v1157_v4 = vmul.f32 1.442695, %v1086_v55  ;;  %v1012_v50 = vpop.permute.xlu1 %1011 }
 0x29c   : > { %1814 = vpow2.f32 %v1151_v59  ;;  %v1087_v9 = vsub.f32 %v2486_v12, %v1012_v50  ;;  %v1088_v28 = vsub.f32 %v2495_v17, %v1012_v50  ;;  %v1089_v63 = vsub.f32 %v2492_v16, %v1012_v50 }
 0x29d   : > { %1816 = vpow2.f32 %v1153_v58  ;;  %v1090_v3 = vsub.f32 %v2507_v26, %v1012_v50 }
 0x29e   : > { %1818 = vpow2.f32 %v1155_v30  ;;  %v1159_v5 = vmul.f32 1.442695, %v1087_v9  ;;  %v1161_v15 = vmul.f32 1.442695, %v1088_v28  ;;  %v1163_v44 = vmul.f32 1.442695, %v1089_v63 }
 0x29f   : > { %1820 = vpow2.f32 %v1157_v4  ;;  %v1165_v6 = vmul.f32 1.442695, %v1090_v3  ;;  %v1017_v49 = vpop.permute.xlu1 %1016 }
 0x2a0   : > { %1822 = vpow2.f32 %v1159_v5  ;;  %v1091_v47 = vsub.f32 %v2498_v20, %v1017_v49  ;;  %v1092_v18 = vsub.f32 %v2503_v24, %v1017_v49  ;;  %v1093_v12 = vsub.f32 %v2510_v27, %v1017_v49 }
 0x2a1   : > { %1824 = vpow2.f32 %v1161_v15  ;;  %v1094_v16 = vsub.f32 %v2521_v37, %v1017_v49 }
 0x2a2   : > { %v1807_v17 = vpop.eup %1806  ;;  %1826 = vpow2.f32 %v1163_v44  ;;  %v1167_v26 = vmul.f32 1.442695, %v1091_v47  ;;  %v1169_v30 = vmul.f32 1.442695, %v1092_v18  ;;  %v1171_v11 = vmul.f32 1.442695, %v1093_v12 }
 0x2a3   : > { %v1809_v40 = vpop.eup %1808  ;;  %1828 = vpow2.f32 %v1165_v6  ;;  %v1173_v14 = vmul.f32 1.442695, %v1094_v16  ;;  %v1022_v60 = vpop.permute.xlu1 %1021 }
 0x2a4   : > { %v1811_v51 = vpop.eup %1810  ;;  %1830 = vpow2.f32 %v1167_v26  ;;  %v1095_v20 = vsub.f32 %v2518_v34, %v1022_v60  ;;  %v1096_v24 = vsub.f32 %v2527_v39, %v1022_v60  ;;  %v1097_v27 = vsub.f32 %v2524_v38, %v1022_v60 }
 0x2a5   : > { %v1813_v55 = vpop.eup %1812  ;;  %1832 = vpow2.f32 %v1169_v30  ;;  %v1098_v37 = vsub.f32 %v2539_v48, %v1022_v60  ;;  %v1271_v59 = vadd.f32 %v1809_v40, %v1807_v17 }
 0x2a6   : > { %v1815_v58 = vpop.eup %1814  ;;  %1834 = vpow2.f32 %v1171_v11  ;;  %v1175_v4 = vmul.f32 1.442695, %v1095_v20  ;;  %v1177_v50 = vmul.f32 1.442695, %v1096_v24  ;;  %v1179_v9 = vmul.f32 1.442695, %v1097_v27 }
 0x2a7   : > { %v1817_v28 = vpop.eup %1816  ;;  %1836 = vpow2.f32 %v1173_v14  ;;  %v1181_v63 = vmul.f32 1.442695, %v1098_v37  ;;  %v1027_v3 = vpop.permute.xlu1 %1026  ;;  %v1272_v5 = vadd.f32 %v1811_v51, %v1271_v59 }
 0x2a8   : > { %v1819_v34 = vpop.eup %1818  ;;  %1838 = vpow2.f32 %v1175_v4  ;;  %v1099_v39 = vsub.f32 %v2530_v42, %v1027_v3  ;;  %v1100_v38 = vsub.f32 %v2535_v46, %v1027_v3  ;;  %v1101_v15 = vsub.f32 %v2542_v52, %v1027_v3 }
 0x2a9   : > { %v1821_v48 = vpop.eup %1820  ;;  %1840 = vpow2.f32 %v1177_v50  ;;  %v1102_v44 = vsub.f32 %v2548_v56, %v1027_v3  ;;  %v1273_v6 = vadd.f32 %v1813_v55, %v1272_v5  ;;  %v1276_v49 = vadd.f32 %v1817_v28, %v1815_v58 }
 0x2aa   : > { %v1823_v47 = vpop.eup %1822  ;;  %1842 = vpow2.f32 %v1179_v9  ;;  %v1183_v18 = vmul.f32 1.442695, %v1099_v39  ;;  %v1185_v12 = vmul.f32 1.442695, %v1100_v38  ;;  %v1187_v16 = vmul.f32 1.442695, %v1101_v15 }
 0x2ab   : > { %v1825_v17 = vpop.eup %1824  ;;  %1844 = vpow2.f32 %v1181_v63  ;;  %v1189_v26 = vmul.f32 1.442695, %v1102_v44  ;;  %1274 = vadd.xlane.f32.xlu1 %v1273_v6  ;;  %v1032_v42 = vpop.permute.xlu1 %1031  ;;  %v1277_v30 = vadd.f32 %v1819_v34, %v1276_v49 }
 0x2ac   : > { %v1827_v46 = vpop.eup %1826  ;;  %1846 = vpow2.f32 %v1183_v18  ;;  %v1103_v52 = vsub.f32 %v2553_v1, %v1032_v42  ;;  %v1104_v11 = vsub.f32 %v2559_v8, %v1032_v42  ;;  %v1105_v56 = vsub.f32 %v2556_v7, %v1032_v42 }
 0x2ad   : > { %v1829_v40 = vpop.eup %1828  ;;  %1848 = vpow2.f32 %v1185_v12  ;;  %v1106_v14 = vsub.f32 %v2571_v22, %v1032_v42  ;;  %v1278_v60 = vadd.f32 %v1821_v48, %v1277_v30  ;;  %v1281_v51 = vadd.f32 %v1825_v17, %v1823_v47 }
 0x2ae   : > { %v1831_v20 = vpop.eup %1830  ;;  %1850 = vpow2.f32 %v1187_v16  ;;  %v1191_v24 = vmul.f32 1.442695, %v1103_v52  ;;  %v1193_v27 = vmul.f32 1.442695, %v1104_v11  ;;  %v1195_v55 = vmul.f32 1.442695, %v1105_v56 }
 0x2af   : > { %v1833_v37 = vpop.eup %1832  ;;  %1852 = vpow2.f32 %v1189_v26  ;;  %v1197_v59 = vmul.f32 1.442695, %v1106_v14  ;;  %1279 = vadd.xlane.f32.xlu0 %v1278_v60  ;;  %v1037_v1 = vpop.permute.xlu1 %1036  ;;  %v1282_v58 = vadd.f32 %v1827_v46, %v1281_v51 }
 0x2b0   : > { %v1835_v8 = vpop.eup %1834  ;;  %1854 = vpow2.f32 %v1191_v24  ;;  %v1107_v7 = vsub.f32 %v2563_v13, %v1037_v1  ;;  %v1108_v4 = vsub.f32 %v2568_v21, %v1037_v1  ;;  %v1109_v22 = vsub.f32 %v2574_v23, %v1037_v1 }
 0x2b1   : > { %v1837_v50 = vpop.eup %1836  ;;  %1856 = vpow2.f32 %v1193_v27  ;;  %v1110_v9 = vsub.f32 %v2580_v29, %v1037_v1  ;;  %v1283_v28 = vadd.f32 %v1829_v40, %v1282_v58  ;;  %v1286_v63 = vadd.f32 %v1833_v37, %v1831_v20 }
 0x2b2   : > { %v1839_v3 = vpop.eup %1838  ;;  %1858 = vpow2.f32 %v1195_v55  ;;  %v1199_v5 = vmul.f32 1.442695, %v1107_v7  ;;  %v1201_v34 = vmul.f32 1.442695, %v1108_v4  ;;  %v1203_v39 = vmul.f32 1.442695, %v1109_v22 }
 0x2b3   : > { %v1841_v38 = vpop.eup %1840  ;;  %1860 = vpow2.f32 %v1197_v59  ;;  %v1205_v15 = vmul.f32 1.442695, %v1110_v9  ;;  %1284 = vadd.xlane.f32.xlu0 %v1283_v28  ;;  %v1042_v13 = vpop.permute.xlu1 %1041  ;;  %v1287_v48 = vadd.f32 %v1835_v8, %v1286_v63  ;;  %v3198_v59 = vld [vmem:[#allocation11_spill] sm:$0xff]  ;;  %v3199_v8 = vld [vmem:[#allocation14_spill] sm:$0xff] }
 0x2b4   : > { %v1843_v21 = vpop.eup %1842  ;;  %1862 = vpow2.f32 %v1199_v5  ;;  %v1111_v23 = vsub.f32 %v2585_v35, %v1042_v13  ;;  %v1112_v44 = vsub.f32 %v2591_v43, %v1042_v13  ;;  %v1113_v29 = vsub.f32 %v2588_v41, %v1042_v13 }
 0x2b5   : > { %v1845_v6 = vpop.eup %1844  ;;  %1864 = vpow2.f32 %v1201_v34  ;;  %v1114_v49 = vsub.f32 %v2603_v0, %v1042_v13  ;;  %v1288_v47 = vadd.f32 %v1837_v50, %v1287_v48  ;;  %v1047_v18 = vpop.permute.xlu0 %1046  ;;  %v1291_v12 = vadd.f32 %v1841_v38, %v1839_v3  ;;  %v3202_v13 = vld [vmem:[#allocation15_spill] sm:$0xff] }
 0x2b6   : > { %v1847_v16 = vpop.eup %1846  ;;  %1866 = vpow2.f32 %v1203_v39  ;;  %v1207_v17 = vmul.f32 1.442695, %v1111_v23  ;;  %v1209_v26 = vmul.f32 1.442695, %v1112_v44  ;;  %v1211_v42 = vmul.f32 1.442695, %v1113_v29 }
 0x2b7   : > { %v1849_v30 = vpop.eup %1848  ;;  %1868 = vpow2.f32 %v1205_v15  ;;  %v1213_v46 = vmul.f32 1.442695, %v1114_v49  ;;  %1289 = vadd.xlane.f32.xlu1 %v1288_v47  ;;  %v1115_v35 = vsub.f32 %v2595_v53, %v1047_v18  ;;  %v1116_v41 = vsub.f32 %v2600_v62, %v1047_v18  ;;  %v3201_v39 = vld [vmem:[#allocation13_spill] sm:$0xff] }
 0x2b8   : > { %v1851_v43 = vpop.eup %1850  ;;  %1870 = vpow2.f32 %v1207_v17  ;;  %v1117_v0 = vsub.f32 %v2606_v2, %v1047_v18  ;;  %v1118_v52 = vsub.f32 %v2612_v10, %v1047_v18  ;;  %v1292_v11 = vadd.f32 %v1843_v21, %v1291_v12  ;;  %v3203_v21 = vld [vmem:[#allocation16_spill] sm:$0xff] }
 0x2b9   : > { %v1853_v56 = vpop.eup %1852  ;;  %1872 = vpow2.f32 %v1209_v26  ;;  %v1215_v40 = vmul.f32 1.442695, %v1115_v35  ;;  %v1217_v14 = vmul.f32 1.442695, %v1116_v41  ;;  %v1296_v60 = vadd.f32 %v1849_v30, %v1847_v16  ;;  %v3204_v35 = vld [vmem:[#allocation17_spill] sm:$0xff] }
 0x2ba   : > { %v1855_v51 = vpop.eup %1854  ;;  %1874 = vpow2.f32 %v1211_v42  ;;  %v1219_v20 = vmul.f32 1.442695, %v1117_v0  ;;  %v1293_v24 = vadd.f32 %v1845_v6, %v1292_v11  ;;  %v1221_v53 = vmul.f32 1.442695, %v1118_v52 }
 0x2bb   : > { %v1857_v27 = vpop.eup %1856  ;;  %1876 = vpow2.f32 %v1213_v46  ;;  %v1052_v62 = vpop.permute.xlu1 %1051  ;;  %v1297_v55 = vadd.f32 %v1851_v43, %v1296_v60  ;;  %v3205_v43 = vld [vmem:[#allocation18_spill] sm:$0xff] }
 0x2bc   : > { %v1859_v37 = vpop.eup %1858  ;;  %1878 = vpow2.f32 %v1215_v40  ;;  %1294 = vadd.xlane.f32.xlu0 %v1293_v24  ;;  %v1119_v2 = vsub.f32 %v2617_v25, %v1052_v62  ;;  %v1120_v10 = vsub.f32 %v2623_v32, %v1052_v62  ;;  %v1121_v1 = vsub.f32 %v3198_v59, %v1052_v62  ;;  %v3200_v25 = vld [vmem:[#allocation12_spill] sm:$0xff] }
 0x2bd   : > { %v1861_v58 = vpop.eup %1860  ;;  %1880 = vpow2.f32 %v1217_v14  ;;  %v1122_v7 = vsub.f32 %v3199_v8, %v1052_v62  ;;  %v1298_v4 = vadd.f32 %v1853_v56, %v1297_v55  ;;  %v1057_v22 = vpop.permute.xlu0 %1056  ;;  %v1301_v50 = vadd.f32 %v1857_v27, %v1855_v51  ;;  %v3206_v56 = vld [vmem:[#allocation21_spill] sm:$0xff] }
 0x2be   : > { %v1863_v9 = vpop.eup %1862  ;;  %1882 = vpow2.f32 %v1219_v20  ;;  %v1223_v28 = vmul.f32 1.442695, %v1119_v2  ;;  %v1225_v63 = vmul.f32 1.442695, %v1120_v10  ;;  %v1227_v3 = vmul.f32 1.442695, %v1121_v1 }
 0x2bf   : > { %v1865_v5 = vpop.eup %1864  ;;  %1884 = vpow2.f32 %v1221_v53  ;;  %v1229_v34 = vmul.f32 1.442695, %v1122_v7  ;;  %1299 = vadd.xlane.f32.xlu1 %v1298_v4  ;;  %v1123_v32 = vsub.f32 %v3200_v25, %v1057_v22  ;;  %v1124_v38 = vsub.f32 %v3201_v39, %v1057_v22  ;;  %v3208_v10 = vld [vmem:[#allocation20_spill] sm:$0xff]  ;;  %v3209_v1 = vld [vmem:[#allocation22_spill] sm:$0xff] }
 0x2c0   : > { %v1867_v15 = vpop.eup %1866  ;;  %1886 = vpow2.f32 %v1223_v28  ;;  %v1125_v48 = vsub.f32 %v3202_v13, %v1057_v22  ;;  %v1126_v23 = vsub.f32 %v3203_v21, %v1057_v22  ;;  %v1302_v44 = vadd.f32 %v1859_v37, %v1301_v50  ;;  %v3207_v37 = vld [vmem:[#allocation19_spill] sm:$0xff] }
 0x2c1   : > { %v1869_v29 = vpop.eup %1868  ;;  %1888 = vpow2.f32 %v1225_v63  ;;  %v1231_v6 = vmul.f32 1.442695, %v1123_v32  ;;  %v1233_v49 = vmul.f32 1.442695, %v1124_v38  ;;  %v1306_v47 = vadd.f32 %v1865_v5, %v1863_v9 }
 0x2c2   : > { %v1871_v18 = vpop.eup %1870  ;;  %1890 = vpow2.f32 %v1227_v3  ;;  %v1235_v12 = vmul.f32 1.442695, %v1125_v48  ;;  %v1303_v16 = vadd.f32 %v1861_v58, %v1302_v44  ;;  %v1237_v26 = vmul.f32 1.442695, %v1126_v23 }
 0x2c3   : > { %v1873_v17 = vpop.eup %1872  ;;  %1892 = vpow2.f32 %v1229_v34  ;;  %v1062_v42 = vpop.permute.xlu1 %1061  ;;  %v1307_v30 = vadd.f32 %v1867_v15, %v1306_v47 }
 0x2c4   : > { %v1875_v46 = vpop.eup %1874  ;;  %1894 = vpow2.f32 %v1231_v6  ;;  %1304 = vadd.xlane.f32.xlu0 %v1303_v16  ;;  %v1127_v41 = vsub.f32 %v3204_v35, %v1062_v42  ;;  %v1128_v0 = vsub.f32 %v3205_v43, %v1062_v42  ;;  %v1129_v52 = vsub.f32 %v2652_v45, %v1062_v42  ;;  %v3210_v16 = vld [vmem:[#allocation23_spill] sm:$0xff] }
 0x2c5   : > { %v1877_v11 = vpop.eup %1876  ;;  %1896 = vpow2.f32 %v1233_v49  ;;  %v1130_v40 = vsub.f32 %v3206_v56, %v1062_v42  ;;  %v1308_v14 = vadd.f32 %v1869_v29, %v1307_v30  ;;  %v1067_v60 = vpop.permute.xlu0 %1066  ;;  %v1311_v51 = vadd.f32 %v1873_v17, %v1871_v18  ;;  %v3211_v17 = vld [vmem:[#allocation24_spill] sm:$0xff] }
 0x2c6   : > { %v1879_v20 = vpop.eup %1878  ;;  %1898 = vpow2.f32 %v1235_v12  ;;  %v1239_v24 = vmul.f32 1.442695, %v1127_v41  ;;  %v1241_v27 = vmul.f32 1.442695, %v1128_v0  ;;  %v1243_v53 = vmul.f32 1.442695, %v1129_v52 }
 0x2c7   : > { %v1881_v62 = vpop.eup %1880  ;;  %1900 = vpow2.f32 %v1237_v26  ;;  %v1245_v55 = vmul.f32 1.442695, %v1130_v40  ;;  %1309 = vadd.xlane.f32.xlu1 %v1308_v14  ;;  %v1131_v2 = vsub.f32 %v3207_v37, %v1067_v60  ;;  %v1132_v45 = vsub.f32 %v3208_v10, %v1067_v60 }
 0x2c8   : > { %v1883_v59 = vpop.eup %1882  ;;  %1902 = vpow2.f32 %v1239_v24  ;;  %v1133_v58 = vsub.f32 %v3209_v1, %v1067_v60  ;;  %v1134_v8 = vsub.f32 %v2676_v54, %v1067_v60  ;;  %v1312_v7 = vadd.f32 %v1875_v46, %v1311_v51 }
 0x2c9   : > { %v1885_v4 = vpop.eup %1884  ;;  %1904 = vpow2.f32 %v1241_v27  ;;  %v1247_v22 = vmul.f32 1.442695, %v1131_v2  ;;  %v1249_v50 = vmul.f32 1.442695, %v1132_v45  ;;  %v1316_v9 = vadd.f32 %v1881_v62, %v1879_v20 }
 0x2ca   : > { %v1887_v28 = vpop.eup %1886  ;;  %1906 = vpow2.f32 %v1243_v53  ;;  %v1251_v63 = vmul.f32 1.442695, %v1133_v58  ;;  %v1313_v3 = vadd.f32 %v1877_v11, %v1312_v7  ;;  %v1253_v34 = vmul.f32 1.442695, %v1134_v8 }
 0x2cb   : > { %v1889_v5 = vpop.eup %1888  ;;  %1908 = vpow2.f32 %v1245_v55  ;;  %v1072_v25 = vpop.permute.xlu1 %1071  ;;  %v1317_v32 = vadd.f32 %v1883_v59, %v1316_v9 }
 0x2cc   : > { %v1891_v39 = vpop.eup %1890  ;;  %1910 = vpow2.f32 %v1247_v22  ;;  %1314 = vadd.xlane.f32.xlu0 %v1313_v3  ;;  %v1135_v54 = vsub.f32 %v2681_v36, %v1072_v25  ;;  %v1136_v38 = vsub.f32 %v2687_v61, %v1072_v25  ;;  %v1137_v15 = vsub.f32 %v2684_v31, %v1072_v25 }
 0x2cd   : > { %v1893_v13 = vpop.eup %1892  ;;  %1912 = vpow2.f32 %v1249_v50  ;;  %v1138_v48 = vsub.f32 %v2699_v57, %v1072_v25  ;;  %v1318_v21 = vadd.f32 %v1885_v4, %v1317_v32  ;;  %v1077_v23 = vpop.permute.xlu0 %1076  ;;  %v1321_v44 = vadd.f32 %v1889_v5, %v1887_v28  ;;  %v3212_v5 = vld [vmem:[#allocation25_spill] sm:$0xff] }
 0x2ce   : > { %v1895_v29 = vpop.eup %1894  ;;  %1914 = vpow2.f32 %v1251_v63  ;;  %v1255_v6 = vmul.f32 1.442695, %v1135_v54  ;;  %v1257_v49 = vmul.f32 1.442695, %v1136_v38  ;;  %v1259_v47 = vmul.f32 1.442695, %v1137_v15 }
 0x2cf   : > { %v1897_v18 = vpop.eup %1896  ;;  %1916 = vpow2.f32 %v1253_v34  ;;  %v1261_v12 = vmul.f32 1.442695, %v1138_v48  ;;  %1319 = vadd.xlane.f32.xlu1 %v1318_v21  ;;  %v1139_v61 = vsub.f32 %v2691_v33, %v1077_v23  ;;  %v1140_v31 = vsub.f32 %v2696_v19, %v1077_v23  ;;  %v3213_v34 = vld [vmem:[#allocation26_spill] sm:$0xff]  ;;  %v3216_v54 = vld [vmem:[#allocation28_spill] sm:$0xff] }
 0x2d0   : > { %v1899_v36 = vpop.eup %1898  ;;  %1918 = vpow2.f32 %v1255_v6  ;;  %v1141_v57 = vsub.f32 %v3210_v16, %v1077_v23  ;;  %v1142_v26 = vsub.f32 %v3211_v17, %v1077_v23  ;;  %v1322_v42 = vadd.f32 %v1891_v39, %v1321_v44  ;;  %v3215_v39 = vld [vmem:[#allocation27_spill] sm:$0xff]  ;;  %v3219_v48 = vld [vmem:[#allocation30_spill] sm:$0xff] }
 0x2d1   : > { %v1901_v30 = vpop.eup %1900  ;;  %1920 = vpow2.f32 %v1257_v49  ;;  %v1263_v46 = vmul.f32 1.442695, %v1139_v61  ;;  %v1265_v35 = vmul.f32 1.442695, %v1140_v31  ;;  %v1326_v41 = vadd.f32 %v1897_v18, %v1895_v29  ;;  %v3221_v44 = vld [vmem:[#allocation31_spill] sm:$0xff]  ;;  %v3222_v29 = vld [vmem:[#allocation32_spill] sm:$0xff] }
 0x2d2   : > { %v1903_v43 = vpop.eup %1902  ;;  %1922 = vpow2.f32 %v1259_v47  ;;  %v1323_v0 = vadd.f32 %v1893_v13, %v1322_v42  ;;  %v1267_v33 = vmul.f32 1.442695, %v1141_v57  ;;  %v1269_v14 = vmul.f32 1.442695, %v1142_v26  ;;  %v3218_v13 = vld [vmem:[#allocation29_spill] sm:$0xff]  ;;  %v967_v18 = vld [vmem:[#allocation3] sm:$0xff] }
 0x2d3   : > { %v1905_v52 = vpop.eup %1904  ;;  %1924 = vpow2.f32 %v1261_v12  ;;  %v1327_v11 = vadd.f32 %v1899_v36, %v1326_v41  ;;  %v3214_v25 = vsub.f32 %v3212_v5, %v3213_v34  ;;  %v3217_v38 = vsub.f32 %v3215_v39, %v3216_v54  ;;  %v3224_v12 = vld [vmem:[#allocation33_spill] sm:$0xff]  ;;  %v3225_v61 = vld [vmem:[#allocation35_spill] sm:$0xff] }
 0x2d4   : > { %v1907_v19 = vpop.eup %1906  ;;  %1926 = vpow2.f32 %v1263_v46  ;;  %1324 = vadd.xlane.f32.xlu0 %v1323_v0  ;;  %v1331_v56 = vadd.f32 %v1905_v52, %v1903_v43  ;;  %v3220_v21 = vsub.f32 %v3218_v13, %v3219_v48  ;;  %v3223_v6 = vsub.f32 %v3221_v44, %v3222_v29  ;;  %v968_v26 = vld [vmem:[#allocation3 + $0x8] sm:$0xff]  ;;  %v3228_v46 = vld [vmem:[#allocation36_spill] sm:$0xff]  ;;  %v3242_v13 = vld [vmem:[#allocation45_spill] sm:$0xff] }
 0x2d5   : > { %v1909_v40 = vpop.eup %1908  ;;  %1928 = vpow2.f32 %v1265_v35  ;;  %v1328_v60 = vadd.f32 %v1901_v30, %v1327_v11  ;;  %v935_v32 = vmul.f32 1.442695, %v3214_v25  ;;  %v937_v15 = vmul.f32 1.442695, %v3217_v38  ;;  %v3227_v30 = vld [vmem:[#allocation34_spill] sm:$0xff]  ;;  %v3243_v48 = vld [vmem:[#allocation47_spill] sm:$0xff] }
 0x2d6   : > { %v1911_v51 = vpop.eup %1910  ;;  %v1332_v20 = vadd.f32 %v1907_v19, %v1331_v56  ;;  %1930 = vpow2.f32 %v1267_v33  ;;  %v939_v23 = vmul.f32 1.442695, %v3220_v21  ;;  %v941_v49 = vmul.f32 1.442695, %v3223_v6  ;;  %v969_v33 = vld [vmem:[#allocation3 + $0x10] sm:$0xff]  ;;  %v3230_v19 = vld [vmem:[#allocation37_spill] sm:$0xff] }
 0x2d7   : > { %v1913_v24 = vpop.eup %1912  ;;  %1329 = vadd.xlane.f32.xlu1 %v1328_v60  ;;  %1932 = vpow2.f32 %v1269_v14  ;;  %v3226_v31 = vsub.f32 %v3224_v12, %v3225_v61  ;;  %v3229_v35 = vsub.f32 %v3227_v30, %v3228_v46  ;;  %v3231_v56 = vld [vmem:[#allocation39_spill] sm:$0xff]  ;;  %v3244_v21 = vsub.f32 %v3242_v13, %v3243_v48  ;;  %v974_v6 = vld [vmem:[#allocation3 + $0x38] sm:$0xff] }
 0x2d8   : > { %v1915_v27 = vpop.eup %1914  ;;  %v1333_v53 = vadd.f32 %v1909_v40, %v1332_v20  ;;  %v1336_v62 = vadd.f32 %v1913_v24, %v1911_v51  ;;  %1934 = vpow2.f32 %v935_v32  ;;  %v3232_v40 = vsub.f32 %v3230_v19, %v3231_v56  ;;  %v970_v24 = vld [vmem:[#allocation3 + $0x18] sm:$0xff] }
 0x2d9   : > { %v1917_v55 = vpop.eup %1916  ;;  %1936 = vpow2.f32 %v937_v15  ;;  %v943_v36 = vmul.f32 1.442695, %v3226_v31  ;;  %v945_v41 = vmul.f32 1.442695, %v3229_v35  ;;  %v973_v15 = vld [vmem:[#allocation3 + $0x30] sm:$0xff]  ;;  %v975_v35 = vld [vmem:[#allocation3 + $0x40] sm:$0xff] }
 0x2da   : > { %v1919_v37 = vpop.eup %1918  ;;  %1334 = vadd.xlane.f32.xlu0 %v1333_v53  ;;  %v1337_v2 = vadd.f32 %v1915_v27, %v1336_v62  ;;  %1938 = vpow2.f32 %v939_v23  ;;  %v947_v14 = vmul.f32 1.442695, %v3232_v40  ;;  %v3233_v53 = vld [vmem:[#allocation38_spill] sm:$0xff]  ;;  %v3234_v62 = vld [vmem:[#allocation40_spill] sm:$0xff]  ;;  %v955_v23 = vmul.f32 1.442695, %v3244_v21 }
 0x2db   : > { %v1921_v10 = vpop.eup %1920  ;;  %1940 = vpow2.f32 %v941_v49 }
 0x2dc   : > { %v1923_v45 = vpop.eup %1922  ;;  %v1338_v59 = vadd.f32 %v1917_v55, %v1337_v2  ;;  %v1341_v1 = vadd.f32 %v1921_v10, %v1919_v37  ;;  %1942 = vpow2.f32 %v943_v36  ;;  %v3235_v55 = vsub.f32 %v3233_v53, %v3234_v62 }
 0x2dd   : > { %v1925_v58 = vpop.eup %1924  ;;  %1944 = vpow2.f32 %v945_v41 }
 0x2de   : > { %v1927_v8 = vpop.eup %1926  ;;  %1339 = vadd.xlane.f32.xlu1 %v1338_v59  ;;  %v1342_v7 = vadd.f32 %v1923_v45, %v1341_v1  ;;  %v949_v37 = vmul.f32 1.442695, %v3235_v55  ;;  %1946 = vpow2.f32 %v947_v14  ;;  %v971_v1 = vld [vmem:[#allocation3 + $0x20] sm:$0xff]  ;;  %v977_v55 = vld [vmem:[#allocation3 + $0x50] sm:$0xff] }
 0x2df   : > { %v1929_v4 = vpop.eup %1928 }
 0x2e0   : > { %v1343_v22 = vadd.f32 %v1925_v58, %v1342_v7  ;;  %v1346_v50 = vadd.f32 %v1929_v4, %v1927_v8  ;;  %v1931_v9 = vpop.eup %1930  ;;  %1948 = vpow2.f32 %v949_v37  ;;  %v3236_v58 = vld [vmem:[#allocation41_spill] sm:$0xff]  ;;  %v3237_v8 = vld [vmem:[#allocation43_spill] sm:$0xff] }
 0x2e1   : > { %v1933_v63 = vpop.eup %1932  ;;  %v3238_v7 = vsub.f32 %v3236_v58, %v3237_v8 }
 0x2e2   : > { %1344 = vadd.xlane.f32.xlu0 %v1343_v22  ;;  %v1347_v28 = vadd.f32 %v1931_v9, %v1346_v50  ;;  %v1935_v47 = vpop.eup %1934  ;;  %v972_v9 = vld [vmem:[#allocation3 + $0x28] sm:$0xff] }
 0x2e3   : > { %v983_v16 = vmul.f32 %v1935_v47, %v967_v18  ;;  %v1937_v57 = vpop.eup %1936  ;;  %v951_v4 = vmul.f32 1.442695, %v3238_v7  ;;  %v3245_v47 = vld [vmem:[#allocation46_spill] sm:$0xff]  ;;  %v3246_v18 = vld [vmem:[#allocation48_spill] sm:$0xff] }
 0x2e4   : > { %v1348_v3 = vadd.f32 %v1933_v63, %v1347_v28  ;;  %v984_v43 = vmul.f32 %v1937_v57, %v968_v26  ;;  %v1939_v0 = vpop.eup %1938  ;;  %v3239_v63 = vld [vmem:[#allocation42_spill] sm:$0xff]  ;;  %v3247_v12 = vsub.f32 %v3245_v47, %v3246_v18  ;;  %v3249_v26 = vld [vmem:[#allocation51_spill] sm:$0xff] }
 0x2e5   : > { %v985_v60 = vmul.f32 %v1939_v0, %v969_v33  ;;  %v1941_v51 = vpop.eup %1940  ;;  %1950 = vpow2.f32 %v951_v4  ;;  %v976_v0 = vld [vmem:[#allocation3 + $0x48] sm:$0xff]  ;;  %v3252_v33 = vld [vmem:[#allocation52_spill] sm:$0xff] }
 0x2e6   : > { %1349 = vadd.xlane.f32.xlu1 %v1348_v3  ;;  %v986_v2 = vmul.f32 %v1941_v51, %v970_v24  ;;  %v1943_v45 = vpop.eup %1942  ;;  %v3240_v3 = vld [vmem:[#allocation44_spill] sm:$0xff]  ;;  %v957_v61 = vmul.f32 1.442695, %v3247_v12  ;;  %v3255_v24 = vld [vmem:[#allocation55_spill] sm:$0xff] }
 0x2e7   : > { %v1945_v22 = vpop.eup %1944  ;;  %v987_v50 = vmul.f32 %v1943_v45, %v971_v1  ;;  %v3241_v5 = vsub.f32 %v3239_v63, %v3240_v3  ;;  %v3257_v45 = vld [vmem:[#allocation54_spill] sm:$0xff] }
 0x2e8   : > { %v988_v32 = vmul.f32 %v1945_v22, %v972_v9  ;;  %v1947_v54 = vpop.eup %1946 }
 0x2e9   : > { %v953_v34 = vmul.f32 1.442695, %v3241_v5  ;;  %v989_v29 = vmul.f32 %v1947_v54, %v973_v15 }
 0x2ea   : > { %v1949_v44 = vpop.eup %1948 }
 0x2eb   : > { %1952 = vpow2.f32 %v953_v34  ;;  %v990_v36 = vmul.f32 %v1949_v44, %v974_v6  ;;  %v980_v34 = vld [vmem:[#allocation3 + $0x68] sm:$0xff] }
 0x2ec   : > { %1954 = vpow2.f32 %v955_v23  ;;  %v982_v23 = vld [vmem:[#allocation3 + $0x78] sm:$0xff] }
 0x2ed   : > { %1956 = vpow2.f32 %v957_v61 }
 0x2ef   : > { %v1951_v57 = vpop.eup %1950 }
 0x2f5   : > { %v1953_v41 = vpop.eup %1952 }
 0x2f6   : > { %v992_v14 = vmul.f32 %v1953_v41, %v976_v0  ;;  %v1955_v51 = vpop.eup %1954  ;;  %v1404_v41 = vld [vmem:[#allocation2] sm:$0xff] (!%p1662_p10) }
 0x2f7   : > { %v1957_v37 = vpop.eup %1956 }
 0x338   : > { %v1275_v17 = vpop.xlane.xlu1 %1274 }
 0x339   : > { %v1351_v42 = vadd.f32 %v1275_v17, %v983_v16  ;;  %v3248_v17 = vld [vmem:[#allocation49_spill] sm:$0xff] }
 0x33b   : > { %1368 = vst.msk [vmem:[#allocation3] sm:$0xff] %vm1367_vm1, %v1351_v42  ;;  %v3250_v42 = vsub.f32 %v3248_v17, %v3249_v26 }
 0x33c   : > { %v1280_v52 = vpop.xlane.xlu0 %1279 }
 0x33d   : > { %v1352_v11 = vadd.f32 %v1280_v52, %v984_v43  ;;  %v959_v30 = vmul.f32 1.442695, %v3250_v42  ;;  %v991_v43 = vmul.f32 %v1951_v57, %v975_v35  ;;  %v3251_v52 = vld [vmem:[#allocation50_spill] sm:$0xff] }
 0x33f   : > { %1369 = vst.msk [vmem:[#allocation3 + $0x8] sm:$0xff] %vm1367_vm1, %v1352_v11  ;;  %1958 = vpow2.f32 %v959_v30  ;;  %v3253_v11 = vsub.f32 %v3251_v52, %v3252_v33  ;;  %v1405_v33 = vld [vmem:[#allocation2 + $0x8] sm:$0xff] (!%p1662_p10) }
 0x340   : > { %v1285_v20 = vpop.xlane.xlu0 %1284 }
 0x341   : > { %v1353_v27 = vadd.f32 %v1285_v20, %v985_v60  ;;  %v961_v19 = vmul.f32 1.442695, %v3253_v11  ;;  %v3254_v20 = vld [vmem:[#allocation53_spill] sm:$0xff] }
 0x342   : > { %v1420_v47 = vld [vmem:[#allocation3] sm:$0xff] (!%p1662_p10) }
 0x343   : > { %1370 = vst.msk [vmem:[#allocation3 + $0x10] sm:$0xff] %vm1367_vm1, %v1353_v27  ;;  %1960 = vpow2.f32 %v961_v19  ;;  %v3256_v27 = vsub.f32 %v3254_v20, %v3255_v24  ;;  %v1407_v24 = vld [vmem:[#allocation2 + $0x18] sm:$0xff] (!%p1662_p10) }
 0x344   : > { %v1290_v10 = vpop.xlane.xlu1 %1289 }
 0x345   : > { %v1354_v59 = vadd.f32 %v1290_v10, %v986_v2  ;;  %v963_v53 = vmul.f32 1.442695, %v3256_v27  ;;  %v993_v2 = vmul.f32 %v1955_v51, %v977_v55  ;;  %v978_v10 = vld [vmem:[#allocation3 + $0x58] sm:$0xff]  ;;  %v1408_v55 = vld [vmem:[#allocation2 + $0x20] sm:$0xff] (!%p1662_p10) }
 0x346   : > { %v994_v22 = vmul.f32 %v1957_v37, %v978_v10  ;;  %v1421_v18 = vld [vmem:[#allocation3 + $0x8] sm:$0xff] (!%p1662_p10) }
 0x347   : > { %1371 = vst.msk [vmem:[#allocation3 + $0x18] sm:$0xff] %vm1367_vm1, %v1354_v59  ;;  %1962 = vpow2.f32 %v963_v53  ;;  %v3258_v59 = vld [vmem:[#allocation56_spill] sm:$0xff] }
 0x348   : > { %v3259_v1 = vsub.f32 %v3257_v45, %v3258_v59  ;;  %v1409_v45 = vld [vmem:[#allocation2 + $0x28] sm:$0xff] (!%p1662_p10) }
 0x349   : > { %v1295_v28 = vpop.xlane.xlu0 %1294  ;;  %v1959_v4 = vpop.eup %1958 }
 0x34a   : > { %v1355_v25 = vadd.f32 %v1295_v28, %v987_v50  ;;  %v965_v58 = vmul.f32 1.442695, %v3259_v1  ;;  %v979_v50 = vld [vmem:[#allocation3 + $0x60] sm:$0xff]  ;;  %v1422_v12 = vld [vmem:[#allocation3 + $0x10] sm:$0xff] (!%p1662_p10) }
 0x34b   : > { %v995_v63 = vmul.f32 %v1959_v4, %v979_v50  ;;  %v1411_v50 = vld [vmem:[#allocation2 + $0x38] sm:$0xff] (!%p1662_p10) }
 0x34c   : > { %1372 = vst.msk [vmem:[#allocation3 + $0x20] sm:$0xff] %vm1367_vm1, %v1355_v25  ;;  %v1300_v39 = vpop.xlane.xlu1 %1299  ;;  %1964 = vpow2.f32 %v965_v58 }
 0x34d   : > { %v1356_v38 = vadd.f32 %v1300_v39, %v988_v32  ;;  %v1961_v3 = vpop.eup %1960  ;;  %1966 = vlog2.f32 (!%p1662_p10), %v1420_v47 }
 0x34e   : > { %v996_v32 = vmul.f32 %v1961_v3, %v980_v34  ;;  %1968 = vlog2.f32 (!%p1662_p10), %v1421_v18  ;;  %v1423_v61 = vld [vmem:[#allocation3 + $0x18] sm:$0xff] (!%p1662_p10)  ;;  %v1412_v3 = vld [vmem:[#allocation2 + $0x40] sm:$0xff] (!%p1662_p10) }
 0x34f   : > { %1373 = vst.msk [vmem:[#allocation3 + $0x28] sm:$0xff] %vm1367_vm1, %v1356_v38  ;;  %v981_v38 = vld [vmem:[#allocation3 + $0x70] sm:$0xff]  ;;  %1970 = vlog2.f32 (!%p1662_p10), %v1422_v12 }
 0x350   : > { %1972 = vlog2.f32 (!%p1662_p10), %v1423_v61  ;;  %v1417_v61 = vld [vmem:[#allocation2 + $0x68] sm:$0xff] (!%p1662_p10) }
 0x351   : > { %v1305_v49 = vpop.xlane.xlu0 %1304  ;;  %v1963_v39 = vpop.eup %1962 }
 0x352   : > { %v1357_v31 = vadd.f32 %v1305_v49, %v989_v29  ;;  %v997_v13 = vmul.f32 %v1963_v39, %v981_v38 }
 0x354   : > { %1374 = vst.msk [vmem:[#allocation3 + $0x30] sm:$0xff] %vm1367_vm1, %v1357_v31  ;;  %v1310_v16 = vpop.xlane.xlu1 %1309  ;;  %v1424_v31 = vld [vmem:[#allocation3 + $0x20] sm:$0xff] (!%p1662_p10) }
 0x355   : > { %v1358_v46 = vadd.f32 %v1310_v16, %v990_v36  ;;  %1974 = vlog2.f32 (!%p1662_p10), %v1424_v31 }
 0x356   : > { %v1965_v48 = vpop.eup %1964  ;;  %v1425_v36 = vld [vmem:[#allocation3 + $0x28] sm:$0xff] (!%p1662_p10) }
 0x357   : > { %1375 = vst.msk [vmem:[#allocation3 + $0x38] sm:$0xff] %vm1367_vm1, %v1358_v46  ;;  %v998_v29 = vmul.f32 %v1965_v48, %v982_v23  ;;  %1976 = vlog2.f32 (!%p1662_p10), %v1425_v36  ;;  %v1967_v35 = vpop.eup (!%p1662_p10), %1966  ;;  %v1415_v23 = vld [vmem:[#allocation2 + $0x58] sm:$0xff] (!%p1662_p10) }
 0x358   : > { %v1969_v0 = vpop.eup (!%p1662_p10), %1968  ;;  %v1437_v52 = vmul.f32 (!%p1662_p10), 0.6931472, %v1967_v35 }
 0x359   : > { %v1315_v56 = vpop.xlane.xlu0 %1314  ;;  %v1971_v19 = vpop.eup (!%p1662_p10), %1970 }
 0x35a   : > { %v1359_v40 = vadd.f32 %v1315_v56, %v991_v43  ;;  %v1439_v56 = vmul.f32 (!%p1662_p10), 0.6931472, %v1969_v0  ;;  %v1468_v51 = vadd.f32 (!%p1662_p10), %v1437_v52, %v1404_v41  ;;  %v1441_v20 = vmul.f32 (!%p1662_p10), 0.6931472, %v1971_v19 }
 0x35b   : > { %v1426_v16 = vld [vmem:[#allocation3 + $0x30] sm:$0xff] (!%p1662_p10) }
 0x35c   : > { %1376 = vst.msk [vmem:[#allocation3 + $0x40] sm:$0xff] %vm1367_vm1, %v1359_v40  ;;  %v1320_v60 = vpop.xlane.xlu1 %1319  ;;  %1978 = vlog2.f32 (!%p1662_p10), %v1426_v16  ;;  %v1406_v40 = vld [vmem:[#allocation2 + $0x10] sm:$0xff] (!%p1662_p10)  ;;  %v1469_v53 = vadd.f32 (!%p1662_p10), %v1439_v56, %v1405_v33  ;;  %1484 = vst.msk [vmem:[%s3087_s3] sm:$0xff] (!%p1662_p10), %vm1367_vm1, %v1468_v51 }
 0x35d   : > { %v1360_v62 = vadd.f32 %v1320_v60, %v992_v14  ;;  %v1973_v60 = vpop.eup (!%p1662_p10), %1972 }
 0x35e   : > { %v1427_v57 = vld [vmem:[#allocation3 + $0x38] sm:$0xff] (!%p1662_p10)  ;;  %1485 = vst.msk [vmem:[%s3087_s3 + $0x8] sm:$0xff] (!%p1662_p10), %vm1367_vm1, %v1469_v53 }
 0x35f   : > { %1377 = vst.msk [vmem:[#allocation3 + $0x48] sm:$0xff] %vm1367_vm1, %v1360_v62  ;;  %1980 = vlog2.f32 (!%p1662_p10), %v1427_v57  ;;  %v1975_v27 = vpop.eup (!%p1662_p10), %1974  ;;  %v1443_v62 = vmul.f32 (!%p1662_p10), 0.6931472, %v1973_v60  ;;  %v1418_v57 = vld [vmem:[#allocation2 + $0x70] sm:$0xff] (!%p1662_p10) }
 0x360   : > { %v1445_v10 = vmul.f32 (!%p1662_p10), 0.6931472, %v1975_v27 }
 0x361   : > { %v1325_v8 = vpop.xlane.xlu0 %1324  ;;  %v1977_v37 = vpop.eup (!%p1662_p10), %1976  ;;  %v1471_v1 = vadd.f32 (!%p1662_p10), %v1443_v62, %v1407_v24 }
 0x362   : > { %v1361_v7 = vadd.f32 %v1325_v8, %v993_v2  ;;  %v1470_v2 = vadd.f32 (!%p1662_p10), %v1441_v20, %v1406_v40  ;;  %v1447_v58 = vmul.f32 (!%p1662_p10), 0.6931472, %v1977_v37  ;;  %v1410_v8 = vld [vmem:[#allocation2 + $0x30] sm:$0xff] (!%p1662_p10)  ;;  %v1472_v4 = vadd.f32 (!%p1662_p10), %v1445_v10, %v1408_v55 }
 0x363   : > { %v1428_v17 = vld [vmem:[#allocation3 + $0x40] sm:$0xff] (!%p1662_p10)  ;;  %1487 = vst.msk [vmem:[%s3087_s3 + $0x18] sm:$0xff] (!%p1662_p10), %vm1367_vm1, %v1471_v1 }
 0x364   : > { %1378 = vst.msk [vmem:[#allocation3 + $0x50] sm:$0xff] %vm1367_vm1, %v1361_v7  ;;  %v1330_v9 = vpop.xlane.xlu1 %1329  ;;  %1982 = vlog2.f32 (!%p1662_p10), %v1428_v17  ;;  %1486 = vst.msk [vmem:[%s3087_s3 + $0x10] sm:$0xff] (!%p1662_p10), %vm1367_vm1, %v1470_v2 }
 0x365   : > { %v1362_v28 = vadd.f32 %v1330_v9, %v994_v22  ;;  %1488 = vst.msk [vmem:[%s3087_s3 + $0x20] sm:$0xff] (!%p1662_p10), %vm1367_vm1, %v1472_v4 }
 0x366   : > { %v1429_v26 = vld [vmem:[#allocation3 + $0x48] sm:$0xff] (!%p1662_p10)  ;;  %v1979_v59 = vpop.eup (!%p1662_p10), %1978 }
 0x367   : > { %1379 = vst.msk [vmem:[#allocation3 + $0x58] sm:$0xff] %vm1367_vm1, %v1362_v28  ;;  %v1335_v5 = vpop.xlane.xlu0 %1334  ;;  %1984 = vlog2.f32 (!%p1662_p10), %v1429_v26  ;;  %v1449_v22 = vmul.f32 (!%p1662_p10), 0.6931472, %v1979_v59  ;;  %v1473_v28 = vadd.f32 (!%p1662_p10), %v1447_v58, %v1409_v45 }
 0x368   : > { %v1363_v25 = vadd.f32 %v1335_v5, %v995_v63 }
 0x369   : > { %v1981_v7 = vpop.eup (!%p1662_p10), %1980  ;;  %v1474_v34 = vadd.f32 (!%p1662_p10), %v1449_v22, %v1410_v8  ;;  %1489 = vst.msk [vmem:[%s3087_s3 + $0x28] sm:$0xff] (!%p1662_p10), %vm1367_vm1, %v1473_v28 }
 0x36a   : > { %1380 = vst.msk [vmem:[#allocation3 + $0x60] sm:$0xff] %vm1367_vm1, %v1363_v25  ;;  %v1451_v63 = vmul.f32 (!%p1662_p10), 0.6931472, %v1981_v7 }
 0x36b   : > { %v1340_v54 = vpop.xlane.xlu1 %1339  ;;  %v1430_v42 = vld [vmem:[#allocation3 + $0x50] sm:$0xff] (!%p1662_p10)  ;;  %1490 = vst.msk [vmem:[%s3087_s3 + $0x30] sm:$0xff] (!%p1662_p10), %vm1367_vm1, %v1474_v34 }
 0x36c   : > { %v1364_v15 = vadd.f32 %v1340_v54, %v996_v32  ;;  %1986 = vlog2.f32 (!%p1662_p10), %v1430_v42  ;;  %v1413_v32 = vld [vmem:[#allocation2 + $0x48] sm:$0xff] (!%p1662_p10)  ;;  %v1475_v54 = vadd.f32 (!%p1662_p10), %v1451_v63, %v1411_v50 }
 0x36e   : > { %1381 = vst.msk [vmem:[#allocation3 + $0x68] sm:$0xff] %vm1367_vm1, %v1364_v15  ;;  %v1431_v30 = vld [vmem:[#allocation3 + $0x58] sm:$0xff] (!%p1662_p10)  ;;  %v1983_v9 = vpop.eup (!%p1662_p10), %1982  ;;  %v1414_v15 = vld [vmem:[#allocation2 + $0x50] sm:$0xff] (!%p1662_p10)  ;;  %1491 = vst.msk [vmem:[%s3087_s3 + $0x38] sm:$0xff] (!%p1662_p10), %vm1367_vm1, %v1475_v54 }
 0x36f   : > { %v1345_v21 = vpop.xlane.xlu0 %1344  ;;  %1988 = vlog2.f32 (!%p1662_p10), %v1431_v30  ;;  %v1453_v25 = vmul.f32 (!%p1662_p10), 0.6931472, %v1983_v9  ;;  %v1419_v30 = vld [vmem:[#allocation2 + $0x78] sm:$0xff] (!%p1662_p10) }
 0x370   : > { %v1365_v44 = vadd.f32 %v1345_v21, %v997_v13  ;;  %1403 = sbr.rel (%p1662_p10) target bundleno = 910 (0x38e), region = 52 }
 0x371   : > { %v1432_v46 = vld [vmem:[#allocation3 + $0x60] sm:$0xff] (!%p1662_p10)  ;;  %v1985_v5 = vpop.eup (!%p1662_p10), %1984  ;;  %v1476_v48 = vadd.f32 (!%p1662_p10), %v1453_v25, %v1412_v3 }
 0x372   : > { %1382 = vst.msk [vmem:[#allocation3 + $0x70] sm:$0xff] %vm1367_vm1, %v1365_v44  ;;  %1990 = vlog2.f32 (!%p1662_p10), %v1432_v46  ;;  %v1455_v38 = vmul.f32 (!%p1662_p10), 0.6931472, %v1985_v5 }
 0x373   : > { %v1350_v6 = vpop.xlane.xlu1 %1349  ;;  %1492 = vst.msk [vmem:[%s3087_s3 + $0x40] sm:$0xff] (!%p1662_p10), %vm1367_vm1, %v1476_v48 }
 0x374   : > { %v1366_v49 = vadd.f32 %v1350_v6, %v998_v29  ;;  %v1477_v29 = vadd.f32 (!%p1662_p10), %v1455_v38, %v1413_v32 }
 0x375   : > { %v1433_v43 = vld [vmem:[#allocation3 + $0x68] sm:$0xff] (!%p1662_p10) }
 0x376   : > { %1383 = vst.msk [vmem:[#allocation3 + $0x78] sm:$0xff] %vm1367_vm1, %v1366_v49  ;;  %1992 = vlog2.f32 (!%p1662_p10), %v1433_v43  ;;  %v1987_v39 = vpop.eup (!%p1662_p10), %1986  ;;  %v1416_v49 = vld [vmem:[#allocation2 + $0x60] sm:$0xff] (!%p1662_p10)  ;;  %1493 = vst.msk [vmem:[%s3087_s3 + $0x48] sm:$0xff] (!%p1662_p10), %vm1367_vm1, %v1477_v29 }
 0x377   : > { %v1457_v21 = vmul.f32 0.6931472, %v1987_v39 }
 0x379   : > { %v1434_v11 = vld [vmem:[#allocation3 + $0x70] sm:$0xff]  ;;  %v1989_v13 = vpop.eup %1988  ;;  %v1478_v18 = vadd.f32 %v1457_v21, %v1414_v15 }
 0x37a   : > { %1994 = vlog2.f32 %v1434_v11  ;;  %v1459_v6 = vmul.f32 0.6931472, %v1989_v13 }
 0x37b   : > { %1494 = vst.msk [vmem:[%s3087_s3 + $0x50] sm:$0xff] %vm1367_vm1, %v1478_v18 }
 0x37c   : > { %v1991_v44 = vpop.eup %1990  ;;  %v1479_v36 = vadd.f32 %v1459_v6, %v1415_v23 }
 0x37d   : > { %v1435_v14 = vld [vmem:[#allocation3 + $0x78] sm:$0xff]  ;;  %v1461_v12 = vmul.f32 0.6931472, %v1991_v44 }
 0x37e   : > { %1996 = vlog2.f32 %v1435_v14  ;;  %1495 = vst.msk [vmem:[%s3087_s3 + $0x58] sm:$0xff] %vm1367_vm1, %v1479_v36 }
 0x37f   : > { %v1480_v26 = vadd.f32 %v1461_v12, %v1416_v49 }
 0x380   : > { %v1993_v47 = vpop.eup %1992 }
 0x381   : > { %v1463_v16 = vmul.f32 0.6931472, %v1993_v47  ;;  %1496 = vst.msk [vmem:[%s3087_s3 + $0x60] sm:$0xff] %vm1367_vm1, %v1480_v26 }
 0x383   : > { %v1481_v46 = vadd.f32 %v1463_v16, %v1417_v61 }
 0x384   : > { %v1995_v31 = vpop.eup %1994 }
 0x385   : > { %v1465_v42 = vmul.f32 0.6931472, %v1995_v31  ;;  %1497 = vst.msk [vmem:[%s3087_s3 + $0x68] sm:$0xff] %vm1367_vm1, %v1481_v46 }
 0x387   : > { %v1482_v41 = vadd.f32 %v1465_v42, %v1418_v57 }
 0x388   : > { %v1997_v17 = vpop.eup %1996 }
 0x389   : > { %v1467_v35 = vmul.f32 0.6931472, %v1997_v17  ;;  %1498 = vst.msk [vmem:[%s3087_s3 + $0x70] sm:$0xff] %vm1367_vm1, %v1482_v41 }
 0x38b   : > { %v1483_v43 = vadd.f32 %v1467_v35, %v1419_v30 }
 0x38d   : > { %1499 = vst.msk [vmem:[%s3087_s3 + $0x78] sm:$0xff] %vm1367_vm1, %v1483_v43 }
 0x38e PF: > { %s17_s17 = sadd.s32 1, %s2140_s17   ;;  %s3260_s12 = smov %s2124_s13 }
 0x38f   : > { %p14_p0 = scmp.ge.s32.totalorder %s17_s17, 4   ;;  %s3261_s13 = smov %s2128_s14 }
 0x390   : > { %s3262_s14 = smov %s2217_s24  ;;  %s3263_s15 = smov %s2136_s16 }
 0x391   : > { %s3264_s16 = smov %s3266_s18  ;;  %16 = sbr.rel (!%p14_p0) target bundleno = 5 (0x5), region = 97 }
 0x398   :  { %1522 = vsyncpa [#allocation5], 1 }
 0x399   :  { %1524 = vsyncpa [#allocation5 + $0x1], 1 }
 0x39a   :  { %1525 = vsyncpa [#allocation7], 1 }
 0x39b   :  { %1527 = vsyncpa [#allocation7 + $0x1], 1 }

</bundles_post_ra>
